<compile_context>
chip_gen: v7x
topology: tpu7x:2x2x1
jax: 0.10.0
libtpu: 0.0.40
codegen_flags: <defaults>
</compile_context>

<pallas_src>
import jax
import jax.numpy as jnp
from jax.experimental import pallas as pl
from jax.experimental.pallas import tpu as pltpu

LANE = 128       # lane width: C_pad and Kp are multiples of this
MAX_TM = 1024    # M tile cap (amortizes per-grid-step overhead)
MAX_TK = 2048    # single-block K cap; above this we tile K with tk=1024
MAX_TN = 512     # output-channel tile cap


def _round_up(x, m):
    return ((x + m - 1) // m) * m


def _pad_k(k_raw):
    """Lane-dense contraction dim; multiples of 1024 once K-tiling kicks in."""
    kp = _round_up(max(k_raw, 1), LANE)
    if kp > MAX_TK:
        kp = _round_up(kp, 1024)
    return kp


def _pad_c(cout):
    """Lane-dense output channels; multiples of MAX_TN once N-tiling kicks in."""
    cp = _round_up(cout, LANE)
    if cp > MAX_TN:
        cp = _round_up(cp, MAX_TN)
    return cp


def _choose_tm(m):
    """>= 2 M-tiles whenever possible (pipelining / megacore), multiple of 8."""
    mp = _round_up(m, 8)
    if mp <= 8:
        return mp
    return min(MAX_TM, _round_up((mp + 1) // 2, 8))


# ---------------------------------------------------------------------------
# Pallas kernel: tiled (im2col-matmul, bf16 on MXU) + folded-BN bias + ReLU
# ---------------------------------------------------------------------------
def _conv_bn_relu_kernel(p_ref, w_ref, bias_ref, o_ref, acc_ref):
    # p_ref:    [tm, tk]   bf16 im2col patch rows
    # w_ref:    [tk, tn]   bf16 conv weights (BN scale pre-folded)
    # bias_ref: [1,  tn]   f32 folded BN bias
    # o_ref:    [tm, tn]   bf16 output tile (lane-dense)
    # acc_ref:  [tm, tn]   f32 VMEM accumulator (persists across K grid axis)
    @pl.when(pl.program_id(2) == 0)
    def _():
        acc_ref[...] = jnp.zeros_like(acc_ref)

    acc_ref[...] += jnp.dot(p_ref[...], w_ref[...],
                            preferred_element_type=jnp.float32)

    @pl.when(pl.program_id(2) == pl.num_programs(2) - 1)
    def _():
        o_ref[...] = jnp.maximum(acc_ref[...] + bias_ref[...],
                                 0.0).astype(o_ref.dtype)


def fused_conv_bn_relu_mm(patches_bf16, w_bf16, bias):
    """[M, Kp](bf16) @ [Kp, C_pad](bf16) + bias + ReLU -> [M, C_pad](bf16)."""
    M, Kp = patches_bf16.shape
    Kw, C_pad = w_bf16.shape
    assert Kp == Kw and C_pad % LANE == 0 and Kp % LANE == 0

    tm = _choose_tm(M)
    grid_m = -(-M // tm)
    Mp = grid_m * tm
    if Mp != M:                                  # full tiles -> unmasked stores
        patches_bf16 = jnp.pad(patches_bf16, ((0, Mp - M), (0, 0)))

    tk = Kp if Kp <= MAX_TK else 1024
    assert Kp % tk == 0
    grid_k = Kp // tk

    tn = C_pad if C_pad <= MAX_TN else MAX_TN
    assert C_pad % tn == 0
    grid_n = C_pad // tn

    # Per-block VMEM footprint (double-buffered inputs/outputs + f32 acc),
    # with 2x headroom, capped below v7x's 64 MiB physical VMEM.
    vmem_est = (2 * tm * tk * 2 + 2 * tk * tn * 2 + 2 * tn * 4
                + 2 * tm * tn * 2 + tm * tn * 4)
    vmem_limit = int(min(64 * 1024 * 1024, max(16 * 1024 * 1024, 2 * vmem_est)))

    out = pl.pallas_call(
        _conv_bn_relu_kernel,
        out_shape=jax.ShapeDtypeStruct((Mp, C_pad), jnp.bfloat16),
        grid_spec=pltpu.PrefetchScalarGridSpec(
            num_scalar_prefetch=0,
            grid=(grid_m, grid_n, grid_k),
            in_specs=[
                pl.BlockSpec((tm, tk), lambda i, j, k: (i, k)),
                pl.BlockSpec((tk, tn), lambda i, j, k: (k, j)),
                pl.BlockSpec((1, tn), lambda i, j, k: (0, j)),
            ],
            out_specs=pl.BlockSpec((tm, tn), lambda i, j, k: (i, j)),
            scratch_shapes=[pltpu.VMEM((tm, tn), jnp.float32)],
        ),
        compiler_params=pltpu.CompilerParams(
            dimension_semantics=("parallel", "parallel", "arbitrary"),
            vmem_limit_bytes=vmem_limit,
        ),
    )(patches_bf16, w_bf16, bias)
    return out[:M] if Mp != M else out


# ---------------------------------------------------------------------------
# Glue: im2col (pure JAX reshuffling in bf16, fused under the outer jit)
# ---------------------------------------------------------------------------
def im2col_nhwc(x_nhwc, k=3, stride=1):
    N, H, W, C = x_nhwc.shape
    pad = k // 2
    xp = jnp.pad(x_nhwc, ((0, 0), (pad, pad), (pad, pad), (0, 0)))
    Ho = (H + 2 * pad - k) // stride + 1
    Wo = (W + 2 * pad - k) // stride + 1
    taps = []
    for di in range(k):
        for dj in range(k):
            taps.append(
                xp[:, di:di + stride * Ho:stride, dj:dj + stride * Wo:stride, :])
    # contraction-dim ordering is (kh, kw, Cin); weights use the same order.
    p = jnp.concatenate(taps, axis=-1)            # [N, Ho, Wo, k*k*C]
    return p.reshape(N * Ho * Wo, k * k * C), (N, Ho, Wo)


def conv_bn_relu_nhwc(x_nhwc_bf16, w_pad_bf16, bias_pad, stride):
    """One synthetic 'layer': 3x3 conv (pad=1) + folded BN + ReLU.

    Input/output NHWC bf16 with lane-padded channel count (C_pad)."""
    # TODO(synk): fold the 3x3 tap gather into the kernel (tap grid axis with
    # halo'd / phase-split input BlockSpecs) to remove the 9x im2col HBM blowup
    # entirely; interim mitigation per review: patches are built in bf16.
    patches, (N, Ho, Wo) = im2col_nhwc(x_nhwc_bf16, k=3, stride=stride)
    K = patches.shape[1]
    Kp, C_pad = w_pad_bf16.shape
    if Kp != K:                                   # layer1 only (K=9*in_ch < 128)
        patches = jnp.pad(patches, ((0, 0), (0, Kp - K)))
    out2d = fused_conv_bn_relu_mm(patches, w_pad_bf16, bias_pad)
    return out2d.reshape(N, Ho, Wo, C_pad)


# ---------------------------------------------------------------------------
# BackboneBase equivalent
# ---------------------------------------------------------------------------
class BackboneBase:
    """JAX/Pallas analogue of the PyTorch BackboneBase.

    The 'backbone' is a synthetic 4-layer conv stack (deterministic params);
    IntermediateLayerGetter semantics are reproduced by collecting each
    layer's output under the mapped name.
    """
    # TODO(synk): frozen/trainable parameter bookkeeping (requires_grad_) has
    # no runtime effect on forward and is not represented here.

    def __init__(self, train_backbone: bool, num_channels: int,
                 return_interm_layers: bool, in_channels: int = 4, seed: int = 0):
        self.num_channels = num_channels
        if return_interm_layers:
            self.return_layers = {"layer1": "0", "layer2": "1",
                                  "layer3": "2", "layer4": "3"}
        else:
            self.return_layers = {"layer4": "0"}

        # layer name -> (Cin_real, Cout_real, stride); layer4 Cout == num_channels
        c1, c2, c3 = num_channels // 4, num_channels // 2, num_channels
        self.layer_cfg = {
            "layer1": (in_channels, c1, 1),
            "layer2": (c1, c2, 2),
            "layer3": (c2, c3, 2),
            "layer4": (c3, num_channels, 2),
        }

        key = jax.random.PRNGKey(seed)
        self.params = {}
        cin_carried = in_channels   # channels physically present in this layer's input
        for name, (cin, cout, _) in self.layer_cfg.items():
            key, kw, ks, kb = jax.random.split(key, 4)
            c_pad = _pad_c(cout)
            k_raw = 9 * cin_carried
            kp = _pad_k(k_raw)
            # Real 3x3 weights, BN scale folded in at init (epilogue = add+relu).
            w_real = jax.random.normal(kw, (3, 3, cin, cout), jnp.float32) * 0.1
            scale = 1.0 + 0.1 * jax.random.normal(ks, (1, cout), jnp.float32)
            bias = 0.1 * jax.random.normal(kb, (1, cout), jnp.float32)
            w_folded = w_real * scale.reshape(1, 1, 1, cout)
            # Embed into the carried/padded channel layout: rows for the
            # zero-padded input channels and columns for padded outputs are
            # exact zeros, so carrying C_pad channels is free correctness-wise.
            w_full = jnp.zeros((3, 3, cin_carried, c_pad), jnp.float32)
            w_full = w_full.at[:, :, :cin, :cout].set(w_folded)
            w2d = w_full.reshape(k_raw, c_pad)
            if kp != k_raw:
                w2d = jnp.pad(w2d, ((0, kp - k_raw), (0, 0)))
            bias_pad = jnp.zeros((1, c_pad), jnp.float32).at[:, :cout].set(bias)
            self.params[name] = (w2d.astype(jnp.bfloat16), bias_pad)
            cin_carried = c_pad     # next layer consumes the lane-padded activation

        self._forward = jax.jit(self._forward_impl)

    def _forward_impl(self, params, x_nchw):
        out = {}
        # NCHW -> NHWC once, cast to bf16 before any im2col pad/concat.
        x = jnp.transpose(x_nchw, (0, 2, 3, 1)).astype(jnp.bfloat16)
        for name, (_, cout, stride) in self.layer_cfg.items():
            w, bias = params[name]
            x = conv_bn_relu_nhwc(x, w, bias, stride)   # NHWC, C_pad chans, bf16
            if name in self.return_layers:
                y = x[..., :cout]                        # drop zero-padded channels
                out[self.return_layers[name]] = jnp.transpose(
                    y, (0, 3, 1, 2)).astype(jnp.float32)
        return out

    def __call__(self, x_nchw):
        return self._forward(self.params, x_nchw)


# ---------------------------------------------------------------------------
# Pure-JAX reference (same math / same bf16 rounding points, no Pallas)
# ---------------------------------------------------------------------------
def _reference_forward(backbone, x_nchw):
    x = jnp.transpose(x_nchw, (0, 2, 3, 1)).astype(jnp.bfloat16)
    out = {}
    for name, (_, cout, stride) in backbone.layer_cfg.items():
        w, bias = backbone.params[name]
        patches, (n, ho, wo) = im2col_nhwc(x, 3, stride)
        K = patches.shape[1]
        Kp, c_pad = w.shape
        if Kp != K:
            patches = jnp.pad(patches, ((0, 0), (0, Kp - K)))
        acc = jnp.dot(patches, w, preferred_element_type=jnp.float32)
        y = jnp.maximum(acc + bias, 0.0).astype(jnp.bfloat16)
        x = y.reshape(n, ho, wo, c_pad)
        if name in backbone.return_layers:
            out[backbone.return_layers[name]] = jnp.transpose(
                x[..., :cout], (0, 3, 1, 2)).astype(jnp.float32)
    return out


# ---------------------------------------------------------------------------
if __name__ == "__main__":
    key = jax.random.PRNGKey(0)
    N, C, H, W = 2, 4, 16, 16
    x = jax.random.normal(key, (N, C, H, W), jnp.float32)

    backbone = BackboneBase(train_backbone=False, num_channels=32,
                            return_interm_layers=True, in_channels=C, seed=0)

    out = backbone(x)
    out = {k: jax.block_until_ready(v) for k, v in out.items()}

    # Sanity: shapes / dtypes against the expected layer strides.
    expected = {"0": (2, 8, 16, 16), "1": (2, 16, 8, 8),
                "2": (2, 32, 4, 4), "3": (2, 32, 2, 2)}
    for k, shp in expected.items():
        assert out[k].shape == shp, (k, out[k].shape, shp)
        assert out[k].dtype == jnp.float32

    # Numerical check against a pure-JAX reference of the whole chain.
    ref = _reference_forward(backbone, x)
    for k in expected:
        assert jnp.allclose(out[k], ref[k], atol=2e-2, rtol=2e-2), f"{k} mismatch"

    print("KERNEL_OK")
</pallas_src>

<mosaic_0001>
module attributes {stable_mosaic.version = 11 : i64} {
  func.func @_conv_bn_relu_kernel(%arg0: i32, %arg1: i32, %arg2: i32, %arg3: memref<256x128xbf16, #tpu.memory_space<vmem>>, %arg4: memref<128x128xbf16, #tpu.memory_space<vmem>>, %arg5: memref<1x128xf32, #tpu.memory_space<vmem>>, %arg6: memref<256x128xbf16, #tpu.memory_space<vmem>>, %arg7: memref<256x128xf32, #tpu.memory_space<vmem>>) attributes {dimension_semantics = [#tpu.dimension_semantics<parallel>, #tpu.dimension_semantics<parallel>, #tpu.dimension_semantics<arbitrary>], iteration_bounds = array<i64: 2, 1, 1>, scalar_prefetch = 0 : i64, scratch_operands = 1 : i64, tpu.core_type = #tpu.core_type<tc>, window_params = [{transform_indices = @transform_0, window_bounds = array<i64: 256, 128>}, {transform_indices = @transform_1, window_bounds = array<i64: 128, 128>}, {transform_indices = @transform_2, window_bounds = array<i64: 1, 128>}, {transform_indices = @transform_3, window_bounds = array<i64: 256, 128>}]} {
    %c0_i32 = arith.constant 0 : i32
    %0 = arith.cmpi eq, %arg2, %c0_i32 : i32
    %1 = arith.extui %0 : i1 to i32
    %c0_i32_0 = arith.constant 0 : i32
    %2 = arith.cmpi ne, %1, %c0_i32_0 : i32
    scf.if %2 {
      %cst_10 = arith.constant 0.000000e+00 : f32
      %12 = vector.broadcast %cst_10 : f32 to vector<256x128xf32>
      %c0_11 = arith.constant 0 : index
      %c0_12 = arith.constant 0 : index
      %13 = vector.load %arg7[%c0_11, %c0_12] : memref<256x128xf32, #tpu.memory_space<vmem>>, vector<256x128xf32>
      tpu.vector_store %arg7[%c0_11, %c0_12], %12 {strides = array<i32>} : memref<256x128xf32, #tpu.memory_space<vmem>>, vector<256x128xf32>,
    } else {
    }
    %c0 = arith.constant 0 : index
    %c0_1 = arith.constant 0 : index
    %3 = vector.load %arg7[%c0, %c0_1] : memref<256x128xf32, #tpu.memory_space<vmem>>, vector<256x128xf32>
    %c0_2 = arith.constant 0 : index
    %c0_3 = arith.constant 0 : index
    %4 = vector.load %arg3[%c0_2, %c0_3] : memref<256x128xbf16, #tpu.memory_space<vmem>>, vector<256x128xbf16>
    %c0_4 = arith.constant 0 : index
    %c0_5 = arith.constant 0 : index
    %5 = vector.load %arg4[%c0_4, %c0_5] : memref<128x128xbf16, #tpu.memory_space<vmem>>, vector<128x128xbf16>
    %cst = arith.constant dense<0.000000e+00> : vector<256x128xf32>
    %6 = tpu.matmul %4, %5, %cst {dimension_numbers = #tpu.dot_dimension_numbers<[1], [0], [0], [1], [0, 0, 1, 1], [], []>} : vector<256x128xbf16>, vector<128x128xbf16>, vector<256x128xf32> -> vector<256x128xf32>
    %7 = arith.addf %3, %6 : vector<256x128xf32>
    %c0_6 = arith.constant 0 : index
    %c0_7 = arith.constant 0 : index
    %8 = vector.load %arg7[%c0_6, %c0_7] : memref<256x128xf32, #tpu.memory_space<vmem>>, vector<256x128xf32>
    tpu.vector_store %arg7[%c0_6, %c0_7], %7 {strides = array<i32>} : memref<256x128xf32, #tpu.memory_space<vmem>>, vector<256x128xf32>,
    %c0_i32_8 = arith.constant 0 : i32
    %9 = arith.cmpi eq, %arg2, %c0_i32_8 : i32
    %10 = arith.extui %9 : i1 to i32
    %c0_i32_9 = arith.constant 0 : i32
    %11 = arith.cmpi ne, %10, %c0_i32_9 : i32
    scf.if %11 {
      %c0_10 = arith.constant 0 : index
      %c0_11 = arith.constant 0 : index
      %12 = vector.load %arg7[%c0_10, %c0_11] : memref<256x128xf32, #tpu.memory_space<vmem>>, vector<256x128xf32>
      %c0_12 = arith.constant 0 : index
      %c0_13 = arith.constant 0 : index
      %13 = vector.load %arg5[%c0_12, %c0_13] : memref<1x128xf32, #tpu.memory_space<vmem>>, vector<1x128xf32>
      %14 = vector.broadcast %13 : vector<1x128xf32> to vector<256x128xf32>
      %15 = arith.addf %12, %14 : vector<256x128xf32>
      %cst_14 = arith.constant 0.000000e+00 : f32
      %16 = vector.broadcast %cst_14 : f32 to vector<256x128xf32>
      %17 = arith.maximumf %15, %16 : vector<256x128xf32>
      %18 = arith.truncf %17 : vector<256x128xf32> to vector<256x128xbf16>
      %c0_15 = arith.constant 0 : index
      %c0_16 = arith.constant 0 : index
      %19 = vector.load %arg6[%c0_15, %c0_16] : memref<256x128xbf16, #tpu.memory_space<vmem>>, vector<256x128xbf16>
      tpu.vector_store %arg6[%c0_15, %c0_16], %18 {strides = array<i32>} : memref<256x128xbf16, #tpu.memory_space<vmem>>, vector<256x128xbf16>,
    } else {
    }
    return
  }
  func.func @transform_0(%arg0: i32, %arg1: i32, %arg2: i32) -> (i32, i32) {
    %c0_i32 = arith.constant 0 : i32
    return %arg0, %arg2 : i32, i32
  }
  func.func @transform_1(%arg0: i32, %arg1: i32, %arg2: i32) -> (i32, i32) {
    %c0_i32 = arith.constant 0 : i32
    return %arg2, %arg1 : i32, i32
  }
  func.func @transform_2(%arg0: i32, %arg1: i32, %arg2: i32) -> (i32, i32) {
    %c0_i32 = arith.constant 0 : i32
    %c0_i32_0 = arith.constant 0 : i32
    return %c0_i32, %arg1 : i32, i32
  }
  func.func @transform_3(%arg0: i32, %arg1: i32, %arg2: i32) -> (i32, i32) {
    %c0_i32 = arith.constant 0 : i32
    return %arg0, %arg1 : i32, i32
  }
}

module attributes {stable_mosaic.version = 11 : i64} {
  func.func @_conv_bn_relu_kernel(%arg0: i32, %arg1: i32, %arg2: i32, %arg3: memref<64x1152xbf16, #tpu.memory_space<vmem>>, %arg4: memref<1152x128xbf16, #tpu.memory_space<vmem>>, %arg5: memref<1x128xf32, #tpu.memory_space<vmem>>, %arg6: memref<64x128xbf16, #tpu.memory_space<vmem>>, %arg7: memref<64x128xf32, #tpu.memory_space<vmem>>) attributes {dimension_semantics = [#tpu.dimension_semantics<parallel>, #tpu.dimension_semantics<parallel>, #tpu.dimension_semantics<arbitrary>], iteration_bounds = array<i64: 2, 1, 1>, scalar_prefetch = 0 : i64, scratch_operands = 1 : i64, tpu.core_type = #tpu.core_type<tc>, window_params = [{transform_indices = @transform_0, window_bounds = array<i64: 64, 1152>}, {transform_indices = @transform_1, window_bounds = array<i64: 1152, 128>}, {transform_indices = @transform_2, window_bounds = array<i64: 1, 128>}, {transform_indices = @transform_3, window_bounds = array<i64: 64, 128>}]} {
    %c0_i32 = arith.constant 0 : i32
    %0 = arith.cmpi eq, %arg2, %c0_i32 : i32
    %1 = arith.extui %0 : i1 to i32
    %c0_i32_0 = arith.constant 0 : i32
    %2 = arith.cmpi ne, %1, %c0_i32_0 : i32
    scf.if %2 {
      %cst_10 = arith.constant 0.000000e+00 : f32
      %12 = vector.broadcast %cst_10 : f32 to vector<64x128xf32>
      %c0_11 = arith.constant 0 : index
      %c0_12 = arith.constant 0 : index
      %13 = vector.load %arg7[%c0_11, %c0_12] : memref<64x128xf32, #tpu.memory_space<vmem>>, vector<64x128xf32>
      tpu.vector_store %arg7[%c0_11, %c0_12], %12 {strides = array<i32>} : memref<64x128xf32, #tpu.memory_space<vmem>>, vector<64x128xf32>,
    } else {
    }
    %c0 = arith.constant 0 : index
    %c0_1 = arith.constant 0 : index
    %3 = vector.load %arg7[%c0, %c0_1] : memref<64x128xf32, #tpu.memory_space<vmem>>, vector<64x128xf32>
    %c0_2 = arith.constant 0 : index
    %c0_3 = arith.constant 0 : index
    %4 = vector.load %arg3[%c0_2, %c0_3] : memref<64x1152xbf16, #tpu.memory_space<vmem>>, vector<64x1152xbf16>
    %c0_4 = arith.constant 0 : index
    %c0_5 = arith.constant 0 : index
    %5 = vector.load %arg4[%c0_4, %c0_5] : memref<1152x128xbf16, #tpu.memory_space<vmem>>, vector<1152x128xbf16>
    %cst = arith.constant dense<0.000000e+00> : vector<64x128xf32>
    %6 = tpu.matmul %4, %5, %cst {dimension_numbers = #tpu.dot_dimension_numbers<[1], [0], [0], [1], [0, 0, 1, 1], [], []>} : vector<64x1152xbf16>, vector<1152x128xbf16>, vector<64x128xf32> -> vector<64x128xf32>
    %7 = arith.addf %3, %6 : vector<64x128xf32>
    %c0_6 = arith.constant 0 : index
    %c0_7 = arith.constant 0 : index
    %8 = vector.load %arg7[%c0_6, %c0_7] : memref<64x128xf32, #tpu.memory_space<vmem>>, vector<64x128xf32>
    tpu.vector_store %arg7[%c0_6, %c0_7], %7 {strides = array<i32>} : memref<64x128xf32, #tpu.memory_space<vmem>>, vector<64x128xf32>,
    %c0_i32_8 = arith.constant 0 : i32
    %9 = arith.cmpi eq, %arg2, %c0_i32_8 : i32
    %10 = arith.extui %9 : i1 to i32
    %c0_i32_9 = arith.constant 0 : i32
    %11 = arith.cmpi ne, %10, %c0_i32_9 : i32
    scf.if %11 {
      %c0_10 = arith.constant 0 : index
      %c0_11 = arith.constant 0 : index
      %12 = vector.load %arg7[%c0_10, %c0_11] : memref<64x128xf32, #tpu.memory_space<vmem>>, vector<64x128xf32>
      %c0_12 = arith.constant 0 : index
      %c0_13 = arith.constant 0 : index
      %13 = vector.load %arg5[%c0_12, %c0_13] : memref<1x128xf32, #tpu.memory_space<vmem>>, vector<1x128xf32>
      %14 = vector.broadcast %13 : vector<1x128xf32> to vector<64x128xf32>
      %15 = arith.addf %12, %14 : vector<64x128xf32>
      %cst_14 = arith.constant 0.000000e+00 : f32
      %16 = vector.broadcast %cst_14 : f32 to vector<64x128xf32>
      %17 = arith.maximumf %15, %16 : vector<64x128xf32>
      %18 = arith.truncf %17 : vector<64x128xf32> to vector<64x128xbf16>
      %c0_15 = arith.constant 0 : index
      %c0_16 = arith.constant 0 : index
      %19 = vector.load %arg6[%c0_15, %c0_16] : memref<64x128xbf16, #tpu.memory_space<vmem>>, vector<64x128xbf16>
      tpu.vector_store %arg6[%c0_15, %c0_16], %18 {strides = array<i32>} : memref<64x128xbf16, #tpu.memory_space<vmem>>, vector<64x128xbf16>,
    } else {
    }
    return
  }
  func.func @transform_0(%arg0: i32, %arg1: i32, %arg2: i32) -> (i32, i32) {
    %c0_i32 = arith.constant 0 : i32
    return %arg0, %arg2 : i32, i32
  }
  func.func @transform_1(%arg0: i32, %arg1: i32, %arg2: i32) -> (i32, i32) {
    %c0_i32 = arith.constant 0 : i32
    return %arg2, %arg1 : i32, i32
  }
  func.func @transform_2(%arg0: i32, %arg1: i32, %arg2: i32) -> (i32, i32) {
    %c0_i32 = arith.constant 0 : i32
    %c0_i32_0 = arith.constant 0 : i32
    return %c0_i32, %arg1 : i32, i32
  }
  func.func @transform_3(%arg0: i32, %arg1: i32, %arg2: i32) -> (i32, i32) {
    %c0_i32 = arith.constant 0 : i32
    return %arg0, %arg1 : i32, i32
  }
}

module attributes {stable_mosaic.version = 11 : i64} {
  func.func @_conv_bn_relu_kernel(%arg0: i32, %arg1: i32, %arg2: i32, %arg3: memref<16x1152xbf16, #tpu.memory_space<vmem>>, %arg4: memref<1152x128xbf16, #tpu.memory_space<vmem>>, %arg5: memref<1x128xf32, #tpu.memory_space<vmem>>, %arg6: memref<16x128xbf16, #tpu.memory_space<vmem>>, %arg7: memref<16x128xf32, #tpu.memory_space<vmem>>) attributes {dimension_semantics = [#tpu.dimension_semantics<parallel>, #tpu.dimension_semantics<parallel>, #tpu.dimension_semantics<arbitrary>], iteration_bounds = array<i64: 2, 1, 1>, scalar_prefetch = 0 : i64, scratch_operands = 1 : i64, tpu.core_type = #tpu.core_type<tc>, window_params = [{transform_indices = @transform_0, window_bounds = array<i64: 16, 1152>}, {transform_indices = @transform_1, window_bounds = array<i64: 1152, 128>}, {transform_indices = @transform_2, window_bounds = array<i64: 1, 128>}, {transform_indices = @transform_3, window_bounds = array<i64: 16, 128>}]} {
    %c0_i32 = arith.constant 0 : i32
    %0 = arith.cmpi eq, %arg2, %c0_i32 : i32
    %1 = arith.extui %0 : i1 to i32
    %c0_i32_0 = arith.constant 0 : i32
    %2 = arith.cmpi ne, %1, %c0_i32_0 : i32
    scf.if %2 {
      %cst_10 = arith.constant 0.000000e+00 : f32
      %12 = vector.broadcast %cst_10 : f32 to vector<16x128xf32>
      %c0_11 = arith.constant 0 : index
      %c0_12 = arith.constant 0 : index
      %13 = vector.load %arg7[%c0_11, %c0_12] : memref<16x128xf32, #tpu.memory_space<vmem>>, vector<16x128xf32>
      tpu.vector_store %arg7[%c0_11, %c0_12], %12 {strides = array<i32>} : memref<16x128xf32, #tpu.memory_space<vmem>>, vector<16x128xf32>,
    } else {
    }
    %c0 = arith.constant 0 : index
    %c0_1 = arith.constant 0 : index
    %3 = vector.load %arg7[%c0, %c0_1] : memref<16x128xf32, #tpu.memory_space<vmem>>, vector<16x128xf32>
    %c0_2 = arith.constant 0 : index
    %c0_3 = arith.constant 0 : index
    %4 = vector.load %arg3[%c0_2, %c0_3] : memref<16x1152xbf16, #tpu.memory_space<vmem>>, vector<16x1152xbf16>
    %c0_4 = arith.constant 0 : index
    %c0_5 = arith.constant 0 : index
    %5 = vector.load %arg4[%c0_4, %c0_5] : memref<1152x128xbf16, #tpu.memory_space<vmem>>, vector<1152x128xbf16>
    %cst = arith.constant dense<0.000000e+00> : vector<16x128xf32>
    %6 = tpu.matmul %4, %5, %cst {dimension_numbers = #tpu.dot_dimension_numbers<[1], [0], [0], [1], [0, 0, 1, 1], [], []>} : vector<16x1152xbf16>, vector<1152x128xbf16>, vector<16x128xf32> -> vector<16x128xf32>
    %7 = arith.addf %3, %6 : vector<16x128xf32>
    %c0_6 = arith.constant 0 : index
    %c0_7 = arith.constant 0 : index
    %8 = vector.load %arg7[%c0_6, %c0_7] : memref<16x128xf32, #tpu.memory_space<vmem>>, vector<16x128xf32>
    tpu.vector_store %arg7[%c0_6, %c0_7], %7 {strides = array<i32>} : memref<16x128xf32, #tpu.memory_space<vmem>>, vector<16x128xf32>,
    %c0_i32_8 = arith.constant 0 : i32
    %9 = arith.cmpi eq, %arg2, %c0_i32_8 : i32
    %10 = arith.extui %9 : i1 to i32
    %c0_i32_9 = arith.constant 0 : i32
    %11 = arith.cmpi ne, %10, %c0_i32_9 : i32
    scf.if %11 {
      %c0_10 = arith.constant 0 : index
      %c0_11 = arith.constant 0 : index
      %12 = vector.load %arg7[%c0_10, %c0_11] : memref<16x128xf32, #tpu.memory_space<vmem>>, vector<16x128xf32>
      %c0_12 = arith.constant 0 : index
      %c0_13 = arith.constant 0 : index
      %13 = vector.load %arg5[%c0_12, %c0_13] : memref<1x128xf32, #tpu.memory_space<vmem>>, vector<1x128xf32>
      %14 = vector.broadcast %13 : vector<1x128xf32> to vector<16x128xf32>
      %15 = arith.addf %12, %14 : vector<16x128xf32>
      %cst_14 = arith.constant 0.000000e+00 : f32
      %16 = vector.broadcast %cst_14 : f32 to vector<16x128xf32>
      %17 = arith.maximumf %15, %16 : vector<16x128xf32>
      %18 = arith.truncf %17 : vector<16x128xf32> to vector<16x128xbf16>
      %c0_15 = arith.constant 0 : index
      %c0_16 = arith.constant 0 : index
      %19 = vector.load %arg6[%c0_15, %c0_16] : memref<16x128xbf16, #tpu.memory_space<vmem>>, vector<16x128xbf16>
      tpu.vector_store %arg6[%c0_15, %c0_16], %18 {strides = array<i32>} : memref<16x128xbf16, #tpu.memory_space<vmem>>, vector<16x128xbf16>,
    } else {
    }
    return
  }
  func.func @transform_0(%arg0: i32, %arg1: i32, %arg2: i32) -> (i32, i32) {
    %c0_i32 = arith.constant 0 : i32
    return %arg0, %arg2 : i32, i32
  }
  func.func @transform_1(%arg0: i32, %arg1: i32, %arg2: i32) -> (i32, i32) {
    %c0_i32 = arith.constant 0 : i32
    return %arg2, %arg1 : i32, i32
  }
  func.func @transform_2(%arg0: i32, %arg1: i32, %arg2: i32) -> (i32, i32) {
    %c0_i32 = arith.constant 0 : i32
    %c0_i32_0 = arith.constant 0 : i32
    return %c0_i32, %arg1 : i32, i32
  }
  func.func @transform_3(%arg0: i32, %arg1: i32, %arg2: i32) -> (i32, i32) {
    %c0_i32 = arith.constant 0 : i32
    return %arg0, %arg1 : i32, i32
  }
}

module attributes {stable_mosaic.version = 11 : i64} {
  func.func @_conv_bn_relu_kernel(%arg0: i32, %arg1: i32, %arg2: i32, %arg3: memref<8x1152xbf16, #tpu.memory_space<vmem>>, %arg4: memref<1152x128xbf16, #tpu.memory_space<vmem>>, %arg5: memref<1x128xf32, #tpu.memory_space<vmem>>, %arg6: memref<8x128xbf16, #tpu.memory_space<vmem>>, %arg7: memref<8x128xf32, #tpu.memory_space<vmem>>) attributes {dimension_semantics = [#tpu.dimension_semantics<parallel>, #tpu.dimension_semantics<parallel>, #tpu.dimension_semantics<arbitrary>], iteration_bounds = array<i64: 1, 1, 1>, scalar_prefetch = 0 : i64, scratch_operands = 1 : i64, tpu.core_type = #tpu.core_type<tc>, window_params = [{transform_indices = @transform_0, window_bounds = array<i64: 8, 1152>}, {transform_indices = @transform_1, window_bounds = array<i64: 1152, 128>}, {transform_indices = @transform_2, window_bounds = array<i64: 1, 128>}, {transform_indices = @transform_3, window_bounds = array<i64: 8, 128>}]} {
    %c0_i32 = arith.constant 0 : i32
    %0 = arith.cmpi eq, %arg2, %c0_i32 : i32
    %1 = arith.extui %0 : i1 to i32
    %c0_i32_0 = arith.constant 0 : i32
    %2 = arith.cmpi ne, %1, %c0_i32_0 : i32
    scf.if %2 {
      %cst_10 = arith.constant 0.000000e+00 : f32
      %12 = vector.broadcast %cst_10 : f32 to vector<8x128xf32>
      %c0_11 = arith.constant 0 : index
      %c0_12 = arith.constant 0 : index
      %13 = vector.load %arg7[%c0_11, %c0_12] : memref<8x128xf32, #tpu.memory_space<vmem>>, vector<8x128xf32>
      tpu.vector_store %arg7[%c0_11, %c0_12], %12 {strides = array<i32>} : memref<8x128xf32, #tpu.memory_space<vmem>>, vector<8x128xf32>,
    } else {
    }
    %c0 = arith.constant 0 : index
    %c0_1 = arith.constant 0 : index
    %3 = vector.load %arg7[%c0, %c0_1] : memref<8x128xf32, #tpu.memory_space<vmem>>, vector<8x128xf32>
    %c0_2 = arith.constant 0 : index
    %c0_3 = arith.constant 0 : index
    %4 = vector.load %arg3[%c0_2, %c0_3] : memref<8x1152xbf16, #tpu.memory_space<vmem>>, vector<8x1152xbf16>
    %c0_4 = arith.constant 0 : index
    %c0_5 = arith.constant 0 : index
    %5 = vector.load %arg4[%c0_4, %c0_5] : memref<1152x128xbf16, #tpu.memory_space<vmem>>, vector<1152x128xbf16>
    %cst = arith.constant dense<0.000000e+00> : vector<8x128xf32>
    %6 = tpu.matmul %4, %5, %cst {dimension_numbers = #tpu.dot_dimension_numbers<[1], [0], [0], [1], [0, 0, 1, 1], [], []>} : vector<8x1152xbf16>, vector<1152x128xbf16>, vector<8x128xf32> -> vector<8x128xf32>
    %7 = arith.addf %3, %6 : vector<8x128xf32>
    %c0_6 = arith.constant 0 : index
    %c0_7 = arith.constant 0 : index
    %8 = vector.load %arg7[%c0_6, %c0_7] : memref<8x128xf32, #tpu.memory_space<vmem>>, vector<8x128xf32>
    tpu.vector_store %arg7[%c0_6, %c0_7], %7 {strides = array<i32>} : memref<8x128xf32, #tpu.memory_space<vmem>>, vector<8x128xf32>,
    %c0_i32_8 = arith.constant 0 : i32
    %9 = arith.cmpi eq, %arg2, %c0_i32_8 : i32
    %10 = arith.extui %9 : i1 to i32
    %c0_i32_9 = arith.constant 0 : i32
    %11 = arith.cmpi ne, %10, %c0_i32_9 : i32
    scf.if %11 {
      %c0_10 = arith.constant 0 : index
      %c0_11 = arith.constant 0 : index
      %12 = vector.load %arg7[%c0_10, %c0_11] : memref<8x128xf32, #tpu.memory_space<vmem>>, vector<8x128xf32>
      %c0_12 = arith.constant 0 : index
      %c0_13 = arith.constant 0 : index
      %13 = vector.load %arg5[%c0_12, %c0_13] : memref<1x128xf32, #tpu.memory_space<vmem>>, vector<1x128xf32>
      %14 = vector.broadcast %13 : vector<1x128xf32> to vector<8x128xf32>
      %15 = arith.addf %12, %14 : vector<8x128xf32>
      %cst_14 = arith.constant 0.000000e+00 : f32
      %16 = vector.broadcast %cst_14 : f32 to vector<8x128xf32>
      %17 = arith.maximumf %15, %16 : vector<8x128xf32>
      %18 = arith.truncf %17 : vector<8x128xf32> to vector<8x128xbf16>
      %c0_15 = arith.constant 0 : index
      %c0_16 = arith.constant 0 : index
      %19 = vector.load %arg6[%c0_15, %c0_16] : memref<8x128xbf16, #tpu.memory_space<vmem>>, vector<8x128xbf16>
      tpu.vector_store %arg6[%c0_15, %c0_16], %18 {strides = array<i32>} : memref<8x128xbf16, #tpu.memory_space<vmem>>, vector<8x128xbf16>,
    } else {
    }
    return
  }
  func.func @transform_0(%arg0: i32, %arg1: i32, %arg2: i32) -> (i32, i32) {
    %c0_i32 = arith.constant 0 : i32
    return %arg0, %arg2 : i32, i32
  }
  func.func @transform_1(%arg0: i32, %arg1: i32, %arg2: i32) -> (i32, i32) {
    %c0_i32 = arith.constant 0 : i32
    return %arg2, %arg1 : i32, i32
  }
  func.func @transform_2(%arg0: i32, %arg1: i32, %arg2: i32) -> (i32, i32) {
    %c0_i32 = arith.constant 0 : i32
    %c0_i32_0 = arith.constant 0 : i32
    return %c0_i32, %arg1 : i32, i32
  }
  func.func @transform_3(%arg0: i32, %arg1: i32, %arg2: i32) -> (i32, i32) {
    %c0_i32 = arith.constant 0 : i32
    return %arg0, %arg1 : i32, i32
  }
}

</mosaic_0001>

<bundles_post_ra>
// kernel: _forward_impl.4
= control target key start
LH: loop header
LB: loop body
LE: loop exit
PB: predicated region body
PF: predicated region fallthrough
CT: control target
= control target key end

     0   :  { %s1499_s12 = smov 0   ;;  %s1501_s13 = smov 0   ;;  %s1636_s0 = inlined_call_operand.vmem [shape: bf16[512,128], index: 0, kind: input, shape index: {}]   ;;  %s1637_s1 = inlined_call_operand.vmem [shape: bf16[128,128], index: 1, kind: input, shape index: {}]   ;;  %s1638_s2 = inlined_call_operand.vmem [shape: f32[1,128], index: 2, kind: input, shape index: {}]   ;;  %s1639_s3 = inlined_call_operand.vmem [shape: bf16[512,128], index: 3, kind: output, shape index: {}]  }
   0x1   :  { %s1503_s14 = smov 0  }
   0x2 LB: > { %s32_s15 = sadd.s32 1, %s1473_s13  ;;  %p1128_p0 = scmp.ge.s32.totalorder %s1477_s14, 1  ;;  %s1477_s14 = sphi %s1503_s14, %s13_s14   ;;  %s1473_s13 = sphi %s1501_s13, %s1641_s13   ;;  %s1469_s12 = sphi %s1499_s12, %s1640_s12  }
   0x3   : > { %p34_p1 = scmp.ge.s32.totalorder %s32_s15, 2  ;;  %p188_p2 = scmp.lt.s32.totalorder %s1477_s14, 3 }
   0x5   : > { %s1643_s15 = smov (%p34_p1, %s32_s15), 0  ;;  %p189_p3 = pnand %p1128_p0, %p188_p2 }
   0x6   : > { %v1431_v0 = vld [vmem:[%s1637_s1] sm:$0xff] (!%p189_p3)   ;;  %s1129_s18 = sshll.u32 (!%p189_p3), %s1469_s12, 5  ;;  %v1432_v1 = vld [vmem:[%s1637_s1 + $0x8] sm:$0xff] (!%p189_p3)   ;;  %v1433_v2 = vld [vmem:[%s1637_s1 + $0x10] sm:$0xff] (!%p189_p3)  }
   0x7   : > { %192 = sbr.rel (%p189_p3) target bundleno = 285 (0x11d), region = 32  ;;  %p230_p4 = scmp.lt.s32.totalorder (!%p189_p3), %s1129_s18, 63  ;;  %1343 = vmatprep.subr.bf16.mxu0 (!%p189_p3), %v1431_v0  ;;  %1391 = vmatprep.subr.bf16.mxu1 (!%p189_p3), %v1431_v0  ;;  %v1434_v3 = vld [vmem:[%s1637_s1 + $0x18] sm:$0xff] (!%p189_p3)   ;;  %v1435_v6 = vld [vmem:[%s1637_s1 + $0x20] sm:$0xff] (!%p189_p3)   ;;  %v1436_v7 = vld [vmem:[%s1637_s1 + $0x28] sm:$0xff] (!%p189_p3)  }
   0x8   : > { %1344 = vmatpush3.bf16.msra.mxu0 (!%p189_p3), %v1431_v0  ;;  %1399 = vmatpush3.bf16.msra.mxu1 (!%p189_p3), %v1431_v0  ;;  %v1437_v8 = vld [vmem:[%s1637_s1 + $0x30] sm:$0xff] (!%p189_p3)   ;;  %v1438_v9 = vld [vmem:[%s1637_s1 + $0x38] sm:$0xff] (!%p189_p3)   ;;  %v1570_v24 = vld [vmem:[%s1638_s2] ss:$0 sm:$0xff] (!%p189_p3) }
   0x9   : > { %1345 = vmatprep.subr.bf16.mxu0 (!%p189_p3), %v1432_v1  ;;  %1392 = vmatprep.subr.bf16.mxu1 (!%p189_p3), %v1432_v1 }
   0xc   : > { %1346 = vmatpush3.bf16.msra.mxu0 (!%p189_p3), %v1432_v1  ;;  %1400 = vmatpush3.bf16.msra.mxu1 (!%p189_p3), %v1432_v1 }
   0xd   : > { %1347 = vmatprep.subr.bf16.mxu0 (!%p189_p3), %v1433_v2  ;;  %1393 = vmatprep.subr.bf16.mxu1 (!%p189_p3), %v1433_v2 }
   0xe   : > { %s1645_s18 = smov (!%p230_p4, %s1129_s18), 63 }
   0xf   : > { %s1130_s23 = sshll.u32 %s1645_s18, 2 }
  0x10   : > { %s1534_s26 = scalar_lea.vmem %s1636_s0, %s1130_s23  ;;  %1348 = vmatpush3.bf16.msra.mxu0 %v1433_v2  ;;  %1401 = vmatpush3.bf16.msra.mxu1 %v1433_v2  ;;  %s1585_s17 = scalar_lea.vmem %s1639_s3, %s1130_s23 }
  0x11   : > { %v1439_v4 = vld [vmem:[%s1534_s26] sm:$0xff]   ;;  %1349 = vmatprep.subr.bf16.mxu0 %v1434_v3  ;;  %1394 = vmatprep.subr.bf16.mxu1 %v1434_v3  ;;  %v1441_v10 = vld [vmem:[%s1534_s26 + $0x8] sm:$0xff]   ;;  %v1443_v12 = vld [vmem:[%s1534_s26 + $0x10] sm:$0xff]  }
  0x12   : > { %v1440_v5 = vld [vmem:[%s1534_s26 + $0x40] sm:$0xff]   ;;  %1359 = vmatprep.mubr.bf16.mxu0 %v1439_v4  ;;  %v1442_v11 = vld [vmem:[%s1534_s26 + $0x48] sm:$0xff]   ;;  %v1444_v13 = vld [vmem:[%s1534_s26 + $0x50] sm:$0xff]  }
  0x13   : > { %1375 = vmatprep.mubr.bf16.mxu1 %v1440_v5  ;;  %v1445_v14 = vld [vmem:[%s1534_s26 + $0x18] sm:$0xff]   ;;  %v1447_v16 = vld [vmem:[%s1534_s26 + $0x20] sm:$0xff]   ;;  %v1449_v18 = vld [vmem:[%s1534_s26 + $0x28] sm:$0xff]  }
  0x14   : > { %1350 = vmatpush3.bf16.msra.mxu0 %v1434_v3  ;;  %1402 = vmatpush3.bf16.msra.mxu1 %v1434_v3  ;;  %v1446_v15 = vld [vmem:[%s1534_s26 + $0x58] sm:$0xff]   ;;  %v1448_v17 = vld [vmem:[%s1534_s26 + $0x60] sm:$0xff]   ;;  %v1450_v19 = vld [vmem:[%s1534_s26 + $0x68] sm:$0xff]  }
  0x15   : > { %1351 = vmatprep.subr.bf16.mxu0 %v1435_v6  ;;  %1395 = vmatprep.subr.bf16.mxu1 %v1435_v6  ;;  %v1451_v20 = vld [vmem:[%s1534_s26 + $0x30] sm:$0xff]   ;;  %v1453_v22 = vld [vmem:[%s1534_s26 + $0x38] sm:$0xff]  }
  0x16   : > { %v1452_v21 = vld [vmem:[%s1534_s26 + $0x70] sm:$0xff]   ;;  %v1454_v23 = vld [vmem:[%s1534_s26 + $0x78] sm:$0xff]  }
  0x18   : > { %1352 = vmatpush3.bf16.msra.mxu0 %v1435_v6  ;;  %1403 = vmatpush3.bf16.msra.mxu1 %v1435_v6 }
  0x19   : > { %1353 = vmatprep.subr.bf16.mxu0 %v1436_v7  ;;  %1396 = vmatprep.subr.bf16.mxu1 %v1436_v7 }
  0x1c   : > { %1354 = vmatpush3.bf16.msra.mxu0 %v1436_v7  ;;  %1404 = vmatpush3.bf16.msra.mxu1 %v1436_v7 }
  0x1d   : > { %1355 = vmatprep.subr.bf16.mxu0 %v1437_v8  ;;  %1397 = vmatprep.subr.bf16.mxu1 %v1437_v8 }
  0x20   : > { %1356 = vmatpush3.bf16.msra.mxu0 %v1437_v8  ;;  %1405 = vmatpush3.bf16.msra.mxu1 %v1437_v8 }
  0x21   : > { %1357 = vmatprep.subr.bf16.mxu0 %v1438_v9  ;;  %1398 = vmatprep.subr.bf16.mxu1 %v1438_v9 }
  0x24   : > { %1358 = vmatpush3.bf16.msra.mxu0 %v1438_v9  ;;  %1406 = vmatpush3.bf16.msra.mxu1 %v1438_v9 }
  0x27   : > { %1360 = vmatmul.mubr.bf16.vlgmr.msra.gmra.mrb[0].mxu0 %v1441_v10  ;;  %1376 = vmatmul.mubr.bf16.vlgmr.msra.gmra.mrb[0].mxu1 %v1442_v11 }
  0x28   : > { %1363 = vmatprep.mubr.bf16.mxu0 %v1443_v12  ;;  %1379 = vmatprep.mubr.bf16.mxu1 %v1444_v13 }
  0x2f   : > { %1364 = vmatmul.mubr.bf16.gmra.mrb[4].mxu0 %v1445_v14  ;;  %1380 = vmatmul.mubr.bf16.gmra.mrb[4].mxu1 %v1446_v15 }
  0x30   : > { %1367 = vmatprep.mubr.bf16.mxu0 %v1447_v16  ;;  %1383 = vmatprep.mubr.bf16.mxu1 %v1448_v17 }
  0x37   : > { %1368 = vmatmul.mubr.bf16.gmra.mrb[8].mxu0 %v1449_v18  ;;  %1384 = vmatmul.mubr.bf16.gmra.mrb[8].mxu1 %v1450_v19 }
  0x38   : > { %1371 = vmatprep.mubr.bf16.mxu0 %v1451_v20  ;;  %1387 = vmatprep.mubr.bf16.mxu1 %v1452_v21 }
  0x3f   : > { %1372 = vmatmul.mubr.bf16.gmra.mrb[12].mxu0 %v1453_v22  ;;  %1388 = vmatmul.mubr.bf16.gmra.mrb[12].mxu1 %v1454_v23 }
  0xfa   : > { %v1361_v25 = vpop.f32.mrb[0].mxu0  ;;  %v1377_v26 = vpop.f32.mrb[0].mxu1 }
  0xfb   : > { %v789_v27 = vadd.f32 %v1361_v25, %v1570_v24  ;;  %v805_v28 = vadd.f32 %v1377_v26, %v1570_v24  ;;  %v554_v29 = vpop.f32.mrb[1].mxu0  ;;  %v618_v30 = vpop.f32.mrb[1].mxu1 }
  0xfc   : > { %v787_v31 = vadd.f32 %v1570_v24, %v554_v29  ;;  %v803_v32 = vadd.f32 %v1570_v24, %v618_v30  ;;  %v1362_v33 = vpop.f32.mrb[2].mxu0  ;;  %v1378_v34 = vpop.f32.mrb[2].mxu1 }
  0xfd   : > { %v790_v35 = vadd.f32 %v1362_v33, %v1570_v24  ;;  %v806_v36 = vadd.f32 %v1378_v34, %v1570_v24  ;;  %v557_v37 = vpop.f32.mrb[3].mxu0  ;;  %v621_v38 = vpop.f32.mrb[3].mxu1  ;;  %v821_v41 = vmax.f32 %v789_v27, 0.0  ;;  %v837_v42 = vmax.f32 %v805_v28, 0.0 }
  0xfe   : > { %v788_v39 = vadd.f32 %v1570_v24, %v557_v37  ;;  %v804_v40 = vadd.f32 %v1570_v24, %v621_v38  ;;  %v819_v45 = vmax.f32 %v787_v31, 0.0  ;;  %v835_v46 = vmax.f32 %v803_v32, 0.0 }
  0xff   : > { %v822_v43 = vmax.f32 %v790_v35, 0.0  ;;  %v838_v44 = vmax.f32 %v806_v36, 0.0 }
 0x100   : > { %v820_v47 = vmax.f32 %v788_v39, 0.0  ;;  %v836_v48 = vmax.f32 %v804_v40, 0.0 }
 0x101   : > { %v1232_v49 = vpack.c.bf16 %v822_v43, %v821_v41  ;;  %v1272_v50 = vpack.c.bf16 %v838_v44, %v837_v42 }
 0x102   : > { %v1227_v51 = vpack.c.bf16 %v820_v47, %v819_v45  ;;  %v1267_v52 = vpack.c.bf16 %v836_v48, %v835_v46  ;;  %v1365_v53 = vpop.f32.mrb[4].mxu0  ;;  %v1381_v54 = vpop.f32.mrb[4].mxu1 }
 0x103   : > { %1304 = vst [vmem:[%s1585_s17 + $0x8] sm:$0xff] %v1232_v49   ;;  %1312 = vst [vmem:[%s1585_s17 + $0x48] sm:$0xff] %v1272_v50   ;;  %v793_v55 = vadd.f32 %v1365_v53, %v1570_v24  ;;  %v809_v56 = vadd.f32 %v1381_v54, %v1570_v24  ;;  %v570_v57 = vpop.f32.mrb[5].mxu0  ;;  %v634_v58 = vpop.f32.mrb[5].mxu1 }
 0x104   : > { %1228 = vst [vmem:[%s1585_s17] sm:$0xff] %v1227_v51   ;;  %1311 = vst [vmem:[%s1585_s17 + $0x40] sm:$0xff] %v1267_v52   ;;  %v791_v59 = vadd.f32 %v1570_v24, %v570_v57  ;;  %v807_v60 = vadd.f32 %v1570_v24, %v634_v58  ;;  %v1366_v61 = vpop.f32.mrb[6].mxu0  ;;  %v1382_v62 = vpop.f32.mrb[6].mxu1 }
 0x105   : > { %v794_v63 = vadd.f32 %v1366_v61, %v1570_v24  ;;  %v810_v0 = vadd.f32 %v1382_v62, %v1570_v24  ;;  %v573_v1 = vpop.f32.mrb[7].mxu0  ;;  %v637_v2 = vpop.f32.mrb[7].mxu1  ;;  %v825_v5 = vmax.f32 %v793_v55, 0.0  ;;  %v841_v6 = vmax.f32 %v809_v56, 0.0 }
 0x106   : > { %v792_v3 = vadd.f32 %v1570_v24, %v573_v1  ;;  %v808_v4 = vadd.f32 %v1570_v24, %v637_v2  ;;  %v823_v9 = vmax.f32 %v791_v59, 0.0  ;;  %v839_v10 = vmax.f32 %v807_v60, 0.0 }
 0x107   : > { %v826_v7 = vmax.f32 %v794_v63, 0.0  ;;  %v842_v8 = vmax.f32 %v810_v0, 0.0 }
 0x108   : > { %v824_v11 = vmax.f32 %v792_v3, 0.0  ;;  %v840_v12 = vmax.f32 %v808_v4, 0.0 }
 0x109   : > { %v1242_v13 = vpack.c.bf16 %v826_v7, %v825_v5  ;;  %v1282_v14 = vpack.c.bf16 %v842_v8, %v841_v6 }
 0x10a   : > { %v1237_v15 = vpack.c.bf16 %v824_v11, %v823_v9  ;;  %v1277_v16 = vpack.c.bf16 %v840_v12, %v839_v10  ;;  %v1369_v17 = vpop.f32.mrb[8].mxu0  ;;  %v1385_v18 = vpop.f32.mrb[8].mxu1 }
 0x10b   : > { %1306 = vst [vmem:[%s1585_s17 + $0x18] sm:$0xff] %v1242_v13   ;;  %1314 = vst [vmem:[%s1585_s17 + $0x58] sm:$0xff] %v1282_v14   ;;  %v797_v19 = vadd.f32 %v1369_v17, %v1570_v24  ;;  %v813_v20 = vadd.f32 %v1385_v18, %v1570_v24  ;;  %v586_v21 = vpop.f32.mrb[9].mxu0  ;;  %v650_v22 = vpop.f32.mrb[9].mxu1 }
 0x10c   : > { %1305 = vst [vmem:[%s1585_s17 + $0x10] sm:$0xff] %v1237_v15   ;;  %1313 = vst [vmem:[%s1585_s17 + $0x50] sm:$0xff] %v1277_v16   ;;  %v795_v23 = vadd.f32 %v1570_v24, %v586_v21  ;;  %v811_v25 = vadd.f32 %v1570_v24, %v650_v22  ;;  %v1370_v26 = vpop.f32.mrb[10].mxu0  ;;  %v1386_v27 = vpop.f32.mrb[10].mxu1 }
 0x10d   : > { %v798_v28 = vadd.f32 %v1370_v26, %v1570_v24  ;;  %v814_v29 = vadd.f32 %v1386_v27, %v1570_v24  ;;  %v589_v30 = vpop.f32.mrb[11].mxu0  ;;  %v653_v31 = vpop.f32.mrb[11].mxu1  ;;  %v829_v34 = vmax.f32 %v797_v19, 0.0  ;;  %v845_v35 = vmax.f32 %v813_v20, 0.0 }
 0x10e   : > { %v796_v32 = vadd.f32 %v1570_v24, %v589_v30  ;;  %v812_v33 = vadd.f32 %v1570_v24, %v653_v31  ;;  %v827_v38 = vmax.f32 %v795_v23, 0.0  ;;  %v843_v39 = vmax.f32 %v811_v25, 0.0 }
 0x10f   : > { %v830_v36 = vmax.f32 %v798_v28, 0.0  ;;  %v846_v37 = vmax.f32 %v814_v29, 0.0 }
 0x110   : > { %v828_v40 = vmax.f32 %v796_v32, 0.0  ;;  %v844_v41 = vmax.f32 %v812_v33, 0.0 }
 0x111   : > { %v1252_v42 = vpack.c.bf16 %v830_v36, %v829_v34  ;;  %v1292_v43 = vpack.c.bf16 %v846_v37, %v845_v35 }
 0x112   : > { %v1247_v44 = vpack.c.bf16 %v828_v40, %v827_v38  ;;  %v1287_v45 = vpack.c.bf16 %v844_v41, %v843_v39  ;;  %v1373_v46 = vpop.f32.mrb[12].mxu0  ;;  %v1389_v47 = vpop.f32.mrb[12].mxu1 }
 0x113   : > { %1308 = vst [vmem:[%s1585_s17 + $0x28] sm:$0xff] %v1252_v42   ;;  %1316 = vst [vmem:[%s1585_s17 + $0x68] sm:$0xff] %v1292_v43   ;;  %v801_v48 = vadd.f32 %v1373_v46, %v1570_v24  ;;  %v817_v49 = vadd.f32 %v1389_v47, %v1570_v24  ;;  %v602_v50 = vpop.f32.mrb[13].mxu0  ;;  %v666_v51 = vpop.f32.mrb[13].mxu1 }
 0x114   : > { %1307 = vst [vmem:[%s1585_s17 + $0x20] sm:$0xff] %v1247_v44   ;;  %1315 = vst [vmem:[%s1585_s17 + $0x60] sm:$0xff] %v1287_v45   ;;  %v799_v52 = vadd.f32 %v1570_v24, %v602_v50  ;;  %v815_v53 = vadd.f32 %v1570_v24, %v666_v51  ;;  %v1374_v54 = vpop.f32.mrb[14].mxu0  ;;  %v1390_v55 = vpop.f32.mrb[14].mxu1 }
 0x115   : > { %v802_v56 = vadd.f32 %v1374_v54, %v1570_v24  ;;  %v818_v57 = vadd.f32 %v1390_v55, %v1570_v24  ;;  %v605_v58 = vpop.f32.mrb[15].mxu0  ;;  %v669_v59 = vpop.f32.mrb[15].mxu1  ;;  %v833_v62 = vmax.f32 %v801_v48, 0.0  ;;  %v849_v63 = vmax.f32 %v817_v49, 0.0 }
 0x116   : > { %v800_v60 = vadd.f32 %v1570_v24, %v605_v58  ;;  %v816_v61 = vadd.f32 %v1570_v24, %v669_v59  ;;  %v831_v2 = vmax.f32 %v799_v52, 0.0  ;;  %v847_v3 = vmax.f32 %v815_v53, 0.0 }
 0x117   : > { %v834_v0 = vmax.f32 %v802_v56, 0.0  ;;  %v850_v1 = vmax.f32 %v818_v57, 0.0 }
 0x118   : > { %v832_v4 = vmax.f32 %v800_v60, 0.0  ;;  %v848_v5 = vmax.f32 %v816_v61, 0.0 }
 0x119   : > { %v1262_v6 = vpack.c.bf16 %v834_v0, %v833_v62  ;;  %v1302_v7 = vpack.c.bf16 %v850_v1, %v849_v63 }
 0x11a   : > { %v1257_v8 = vpack.c.bf16 %v832_v4, %v831_v2  ;;  %v1297_v9 = vpack.c.bf16 %v848_v5, %v847_v3 }
 0x11b   : > { %1310 = vst [vmem:[%s1585_s17 + $0x38] sm:$0xff] %v1262_v6   ;;  %1318 = vst [vmem:[%s1585_s17 + $0x78] sm:$0xff] %v1302_v7  }
 0x11c   : > { %1309 = vst [vmem:[%s1585_s17 + $0x30] sm:$0xff] %v1257_v8   ;;  %1317 = vst [vmem:[%s1585_s17 + $0x70] sm:$0xff] %v1297_v9  }
 0x11d PF: > { %s13_s14 = sadd.s32 1, %s1477_s14   ;;  %s1640_s12 = smov %s1473_s13 }
 0x11e   : > { %p10_p5 = scmp.ge.s32.totalorder %s13_s14, 4   ;;  %s1641_s13 = smov %s1643_s15 }
 0x120   :  { %12 = sbr.rel (!%p10_p5) target bundleno = 2 (0x2), region = 76 }

// kernel: _forward_impl.5
= control target key start
LH: loop header
LB: loop body
LE: loop exit
PB: predicated region body
PF: predicated region fallthrough
CT: control target
= control target key end

     0   :  { %s2183_s12 = smov 0   ;;  %s2185_s13 = smov 0   ;;  %s2483_s0 = inlined_call_operand.vmem [shape: bf16[128,1152], index: 0, kind: input, shape index: {}]   ;;  %s2484_s1 = inlined_call_operand.vmem [shape: bf16[1152,128], index: 1, kind: input, shape index: {}]   ;;  %s2485_s2 = inlined_call_operand.vmem [shape: f32[1,128], index: 2, kind: input, shape index: {}]   ;;  %s2486_s3 = inlined_call_operand.vmem [shape: bf16[128,128], index: 3, kind: output, shape index: {}]  }
   0x1   :  { %s2187_s14 = smov 0  }
   0x2 LB: > { %s32_s15 = sadd.s32 1, %s2157_s13  ;;  %p1623_p0 = scmp.ge.s32.totalorder %s2161_s14, 1  ;;  %s2161_s14 = sphi %s2187_s14, %s13_s14   ;;  %s2157_s13 = sphi %s2185_s13, %s2488_s13   ;;  %s2153_s12 = sphi %s2183_s12, %s2487_s12  }
   0x3   : > { %p34_p1 = scmp.ge.s32.totalorder %s32_s15, 2  ;;  %p191_p2 = scmp.lt.s32.totalorder %s2161_s14, 3 }
   0x5   : > { %s2490_s15 = smov (%p34_p1, %s32_s15), 0  ;;  %p192_p3 = pnand %p1623_p0, %p191_p2 }
   0x6   : > { %v2015_v0 = vld [vmem:[%s2484_s1 + $0x40] sm:$0xff] (!%p192_p3)   ;;  %v2019_v4 = vld [vmem:[%s2484_s1 + $0x48] sm:$0xff] (!%p192_p3)   ;;  %v2023_v8 = vld [vmem:[%s2484_s1 + $0x50] sm:$0xff] (!%p192_p3)   ;;  %s1624_s23 = sshll.u32 (!%p192_p3), %s2153_s12, 3 }
   0x7   : > { %195 = sbr.rel (%p192_p3) target bundleno = 330 (0x14a), region = 32  ;;  %v2016_v1 = vld [vmem:[%s2484_s1 + $0xc0] sm:$0xff] (!%p192_p3)   ;;  %1778 = vmatprep.subr.bf16.mxu0 (!%p192_p3), %v2015_v0  ;;  %v2020_v5 = vld [vmem:[%s2484_s1 + $0xc8] sm:$0xff] (!%p192_p3)   ;;  %v2024_v9 = vld [vmem:[%s2484_s1 + $0xd0] sm:$0xff] (!%p192_p3)   ;;  %p236_p4 = scmp.lt.s32.totalorder (!%p192_p3), %s1624_s23, 15 }
   0x8   : > { %v2017_v2 = vld [vmem:[%s2484_s1] sm:$0xff] (!%p192_p3)   ;;  %1818 = vmatprep.subr.bf16.mxu1 (!%p192_p3), %v2016_v1  ;;  %v2021_v6 = vld [vmem:[%s2484_s1 + $0x8] sm:$0xff] (!%p192_p3)   ;;  %v2025_v10 = vld [vmem:[%s2484_s1 + $0x10] sm:$0xff] (!%p192_p3)  }
   0x9   : > { %v2018_v3 = vld [vmem:[%s2484_s1 + $0x80] sm:$0xff] (!%p192_p3)   ;;  %1779 = vmatpush3.bf16.msra.mxu0 (!%p192_p3), %v2017_v2  ;;  %v2022_v7 = vld [vmem:[%s2484_s1 + $0x88] sm:$0xff] (!%p192_p3)   ;;  %v2026_v11 = vld [vmem:[%s2484_s1 + $0x90] sm:$0xff] (!%p192_p3)  }
   0xa   : > { %1819 = vmatpush3.bf16.msra.mxu1 (!%p192_p3), %v2018_v3  ;;  %1780 = vmatprep.subr.bf16.mxu0 (!%p192_p3), %v2019_v4  ;;  %v2027_v12 = vld [vmem:[%s2484_s1 + $0x58] sm:$0xff] (!%p192_p3)   ;;  %v2031_v16 = vld [vmem:[%s2484_s1 + $0x60] sm:$0xff] (!%p192_p3)   ;;  %v2035_v20 = vld [vmem:[%s2484_s1 + $0x68] sm:$0xff] (!%p192_p3)  }
   0xb   : > { %1820 = vmatprep.subr.bf16.mxu1 (!%p192_p3), %v2020_v5  ;;  %v2028_v13 = vld [vmem:[%s2484_s1 + $0xd8] sm:$0xff] (!%p192_p3)   ;;  %v2032_v17 = vld [vmem:[%s2484_s1 + $0xe0] sm:$0xff] (!%p192_p3)   ;;  %v2036_v21 = vld [vmem:[%s2484_s1 + $0xe8] sm:$0xff] (!%p192_p3)  }
   0xc   : > { %v2029_v14 = vld [vmem:[%s2484_s1 + $0x18] sm:$0xff] (!%p192_p3)   ;;  %v2033_v18 = vld [vmem:[%s2484_s1 + $0x20] sm:$0xff] (!%p192_p3)   ;;  %v2037_v22 = vld [vmem:[%s2484_s1 + $0x28] sm:$0xff] (!%p192_p3)  }
   0xd   : > { %1781 = vmatpush3.bf16.msra.mxu0 (!%p192_p3), %v2021_v6  ;;  %v2030_v15 = vld [vmem:[%s2484_s1 + $0x98] sm:$0xff] (!%p192_p3)   ;;  %v2034_v19 = vld [vmem:[%s2484_s1 + $0xa0] sm:$0xff] (!%p192_p3)   ;;  %v2038_v23 = vld [vmem:[%s2484_s1 + $0xa8] sm:$0xff] (!%p192_p3)  }
   0xe   : > { %1821 = vmatpush3.bf16.msra.mxu1 %v2022_v7  ;;  %1782 = vmatprep.subr.bf16.mxu0 %v2023_v8  ;;  %s2492_s23 = smov (!%p236_p4, %s1624_s23), 15  ;;  %v2039_v24 = vld [vmem:[%s2484_s1 + $0x70] sm:$0xff]   ;;  %v2043_v28 = vld [vmem:[%s2484_s1 + $0x78] sm:$0xff]   ;;  %v2053_v36 = vld [vmem:[%s2484_s1 + $0x140] sm:$0xff]  }
   0xf   : > { %1822 = vmatprep.subr.bf16.mxu1 %v2024_v9  ;;  %v2040_v25 = vld [vmem:[%s2484_s1 + $0xf0] sm:$0xff]   ;;  %s1990_s22 = smul.u32 36, %s2492_s23  ;;  %v2044_v29 = vld [vmem:[%s2484_s1 + $0xf8] sm:$0xff]   ;;  %v2054_v37 = vld [vmem:[%s2484_s1 + $0x1c0] sm:$0xff]   ;;  %s1627_s4 = sshll.u32 %s2492_s23, 2 }
  0x10   : > { %v2041_v26 = vld [vmem:[%s2484_s1 + $0x30] sm:$0xff]   ;;  %v2045_v30 = vld [vmem:[%s2484_s1 + $0x38] sm:$0xff]   ;;  %v2055_v38 = vld [vmem:[%s2484_s1 + $0x100] sm:$0xff]   ;;  %s265_s7 = scalar_lea.vmem %s2486_s3, %s1627_s4 }
  0x11   : > { %1783 = vmatpush3.bf16.msra.mxu0 %v2025_v10  ;;  %v2042_v27 = vld [vmem:[%s2484_s1 + $0xb0] sm:$0xff]   ;;  %s2300_s6 = scalar_lea.vmem %s2483_s0, %s1990_s22  ;;  %v2046_v31 = vld [vmem:[%s2484_s1 + $0xb8] sm:$0xff]   ;;  %v2056_v39 = vld [vmem:[%s2484_s1 + $0x180] sm:$0xff]  }
  0x12   : > { %1823 = vmatpush3.bf16.msra.mxu1 %v2026_v11  ;;  %1784 = vmatprep.subr.bf16.mxu0 %v2027_v12  ;;  %v2047_v32 = vld [vmem:[%s2300_s6] ss:$36 sps:$4 sm:$0xff]   ;;  %v2050_v34 = vld [vmem:[%s2300_s6 + $0x8] ss:$36 sps:$4 sm:$0xff]   ;;  %v2063_v45 = vld [vmem:[%s2300_s6 + $0x54] ss:$36 sps:$4 sm:$0xff]  }
  0x13   : > { %1824 = vmatprep.subr.bf16.mxu1 %v2028_v13  ;;  %v2049_v33 = vld [vmem:[%s2300_s6 + $0x4] ss:$36 sps:$4 sm:$0xff]   ;;  %v2052_v35 = vld [vmem:[%s2300_s6 + $0xc] ss:$36 sps:$4 sm:$0xff]   ;;  %v2071_v52 = vld [vmem:[%s2484_s1 + $0x158] sm:$0xff]  }
  0x14   : > { %1120 = vmatprep.mubr.bf16.mxu0 %v2049_v33  ;;  %1185 = vmatprep.mubr.bf16.mxu1 %v2052_v35  ;;  %v2057_v40 = vld [vmem:[%s2484_s1 + $0x148] sm:$0xff]   ;;  %v2066_v47 = vld [vmem:[%s2300_s6 + $0x50] ss:$36 sps:$4 sm:$0xff]   ;;  %v2072_v53 = vld [vmem:[%s2484_s1 + $0x1d8] sm:$0xff]  }
  0x15   : > { %1785 = vmatpush3.bf16.msra.mxu0 %v2029_v14  ;;  %v2058_v41 = vld [vmem:[%s2484_s1 + $0x1c8] sm:$0xff]   ;;  %v2067_v48 = vld [vmem:[%s2484_s1 + $0x150] sm:$0xff]   ;;  %v2073_v54 = vld [vmem:[%s2484_s1 + $0x118] sm:$0xff]  }
  0x16   : > { %1825 = vmatpush3.bf16.msra.mxu1 %v2030_v15  ;;  %1786 = vmatprep.subr.bf16.mxu0 %v2031_v16  ;;  %v2059_v42 = vld [vmem:[%s2484_s1 + $0x108] sm:$0xff]   ;;  %v2068_v49 = vld [vmem:[%s2484_s1 + $0x1d0] sm:$0xff]   ;;  %v2074_v55 = vld [vmem:[%s2484_s1 + $0x198] sm:$0xff]  }
  0x17   : > { %1826 = vmatprep.subr.bf16.mxu1 %v2032_v17  ;;  %v2060_v43 = vld [vmem:[%s2484_s1 + $0x188] sm:$0xff]   ;;  %v2069_v50 = vld [vmem:[%s2484_s1 + $0x110] sm:$0xff]   ;;  %v2077_v57 = vld [vmem:[%s2300_s6 + $0x9c] ss:$36 sps:$4 sm:$0xff]  }
  0x18   : > { %v2061_v44 = vld [vmem:[%s2300_s6 + $0x4c] ss:$36 sps:$4 sm:$0xff]   ;;  %v2075_v56 = vld [vmem:[%s2300_s6 + $0x94] ss:$36 sps:$4 sm:$0xff]   ;;  %v2081_v60 = vld [vmem:[%s2484_s1 + $0x160] sm:$0xff]  }
  0x19   : > { %1787 = vmatpush3.bf16.msra.mxu0 %v2033_v18  ;;  %v2065_v46 = vld [vmem:[%s2300_s6 + $0x48] ss:$36 sps:$4 sm:$0xff]   ;;  %v2070_v51 = vld [vmem:[%s2484_s1 + $0x190] sm:$0xff]   ;;  %v2080_v59 = vld [vmem:[%s2300_s6 + $0x98] ss:$36 sps:$4 sm:$0xff]  }
  0x1a   : > { %1827 = vmatpush3.bf16.msra.mxu1 %v2034_v19  ;;  %1788 = vmatprep.subr.bf16.mxu0 %v2035_v20  ;;  %v2079_v58 = vld [vmem:[%s2300_s6 + $0x90] ss:$36 sps:$4 sm:$0xff]   ;;  %v2082_v61 = vld [vmem:[%s2484_s1 + $0x1e0] sm:$0xff]   ;;  %v2085_v0 = vld [vmem:[%s2484_s1 + $0x168] sm:$0xff]  }
  0x1b   : > { %1828 = vmatprep.subr.bf16.mxu1 %v2036_v21  ;;  %v2083_v62 = vld [vmem:[%s2484_s1 + $0x120] sm:$0xff]   ;;  %v2086_v1 = vld [vmem:[%s2484_s1 + $0x1e8] sm:$0xff]   ;;  %v2093_v6 = vld [vmem:[%s2300_s6 + $0xd8] ss:$36 sps:$4 sm:$0xff]  }
  0x1c   : > { %v2084_v63 = vld [vmem:[%s2484_s1 + $0x1a0] sm:$0xff]   ;;  %v2087_v2 = vld [vmem:[%s2484_s1 + $0x128] sm:$0xff]   ;;  %v2095_v8 = vld [vmem:[%s2484_s1 + $0x170] sm:$0xff]  }
  0x1d   : > { %1789 = vmatpush3.bf16.msra.mxu0 %v2037_v22  ;;  %v2088_v3 = vld [vmem:[%s2484_s1 + $0x1a8] sm:$0xff]   ;;  %v2089_v4 = vld [vmem:[%s2300_s6 + $0xdc] ss:$36 sps:$4 sm:$0xff]   ;;  %v2096_v9 = vld [vmem:[%s2484_s1 + $0x1f0] sm:$0xff]  }
  0x1e   : > { %1829 = vmatpush3.bf16.msra.mxu1 %v2038_v23  ;;  %1790 = vmatprep.subr.bf16.mxu0 %v2039_v24  ;;  %v2091_v5 = vld [vmem:[%s2300_s6 + $0xe4] ss:$36 sps:$4 sm:$0xff]   ;;  %v2097_v10 = vld [vmem:[%s2484_s1 + $0x130] sm:$0xff]   ;;  %v2099_v12 = vld [vmem:[%s2484_s1 + $0x178] sm:$0xff]  }
  0x1f   : > { %1830 = vmatprep.subr.bf16.mxu1 %v2040_v25  ;;  %v2094_v7 = vld [vmem:[%s2300_s6 + $0xe0] ss:$36 sps:$4 sm:$0xff]   ;;  %v2098_v11 = vld [vmem:[%s2484_s1 + $0x1b0] sm:$0xff]   ;;  %v2100_v13 = vld [vmem:[%s2484_s1 + $0x1f8] sm:$0xff]  }
  0x20   : > { %v2101_v14 = vld [vmem:[%s2484_s1 + $0x138] sm:$0xff]   ;;  %v2103_v16 = vld [vmem:[%s2300_s6 + $0x10] ss:$36 sps:$4 sm:$0xff]   ;;  %v2109_v20 = vld [vmem:[%s2484_s1 + $0x200] sm:$0xff]  }
  0x21   : > { %1791 = vmatpush3.bf16.msra.mxu0 %v2041_v26  ;;  %v2102_v15 = vld [vmem:[%s2484_s1 + $0x1b8] sm:$0xff]   ;;  %v2110_v21 = vld [vmem:[%s2484_s1 + $0x208] sm:$0xff]   ;;  %v2116_v25 = vld [vmem:[%s2300_s6 + $0x60] ss:$36 sps:$4 sm:$0xff]  }
  0x22   : > { %1831 = vmatpush3.bf16.msra.mxu1 %v2042_v27  ;;  %1792 = vmatprep.subr.bf16.mxu0 %v2043_v28  ;;  %v2105_v17 = vld [vmem:[%s2300_s6 + $0x14] ss:$36 sps:$4 sm:$0xff]   ;;  %v2108_v19 = vld [vmem:[%s2300_s6 + $0x1c] ss:$36 sps:$4 sm:$0xff]   ;;  %v2113_v23 = vld [vmem:[%s2300_s6 + $0x64] ss:$36 sps:$4 sm:$0xff]  }
  0x23   : > { %1832 = vmatprep.subr.bf16.mxu1 %v2044_v29  ;;  %v2106_v18 = vld [vmem:[%s2300_s6 + $0x18] ss:$36 sps:$4 sm:$0xff]   ;;  %v2117_v26 = vld [vmem:[%s2484_s1 + $0x210] sm:$0xff]   ;;  %v2119_v27 = vld [vmem:[%s2300_s6 + $0xa4] ss:$36 sps:$4 sm:$0xff]  }
  0x24   : > { %v2111_v22 = vld [vmem:[%s2300_s6 + $0x5c] ss:$36 sps:$4 sm:$0xff]   ;;  %v2121_v28 = vld [vmem:[%s2300_s6 + $0xac] ss:$36 sps:$4 sm:$0xff]  }
  0x25   : > { %1793 = vmatpush3.bf16.msra.mxu0 %v2045_v30  ;;  %v2115_v24 = vld [vmem:[%s2300_s6 + $0x58] ss:$36 sps:$4 sm:$0xff]   ;;  %v2123_v30 = vld [vmem:[%s2300_s6 + $0xa0] ss:$36 sps:$4 sm:$0xff]   ;;  %v2127_v33 = vld [vmem:[%s2300_s6 + $0xec] ss:$36 sps:$4 sm:$0xff]  }
  0x26   : > { %1833 = vmatpush3.bf16.msra.mxu1 %v2046_v31  ;;  %1858 = vmatprep.subr.bf16.mxu0 %v2053_v36  ;;  %v2118_v29 = vld [vmem:[%s2484_s1 + $0x218] sm:$0xff]   ;;  %v2124_v31 = vld [vmem:[%s2300_s6 + $0xa8] ss:$36 sps:$4 sm:$0xff]  }
  0x27   : > { %1898 = vmatprep.subr.bf16.mxu1 %v2054_v37  ;;  %v2126_v35 = vld [vmem:[%s2484_s1 + $0x228] sm:$0xff]   ;;  %v2133_v37 = vld [vmem:[%s2484_s1 + $0x230] sm:$0xff]  }
  0x28   : > { %1121 = vmatmul.mubr.bf16.vlgmr.msra.gmra.mrb[0].mxu0 %v2047_v32  ;;  %v2125_v32 = vld [vmem:[%s2484_s1 + $0x220] sm:$0xff]   ;;  %v2131_v36 = vld [vmem:[%s2300_s6 + $0xe8] ss:$36 sps:$4 sm:$0xff]  }
  0x29   : > { %1186 = vmatmul.mubr.bf16.vlgmr.msra.gmra.mrb[0].mxu1 %v2050_v34  ;;  %1859 = vmatpush3.bf16.msra.mxu0 %v2055_v38  ;;  %v2129_v34 = vld [vmem:[%s2300_s6 + $0xf4] ss:$36 sps:$4 sm:$0xff]  }
  0x2a   : > { %1899 = vmatpush3.bf16.msra.mxu1 %v2056_v39  ;;  %1860 = vmatprep.subr.bf16.mxu0 %v2057_v40  ;;  %v2132_v38 = vld [vmem:[%s2300_s6 + $0xf0] ss:$36 sps:$4 sm:$0xff]   ;;  %v2135_v39 = vld [vmem:[%s2300_s6 + $0x20] ss:$36 sps:$4 sm:$0xff]  }
  0x2b   : > { %1900 = vmatprep.subr.bf16.mxu1 %v2058_v41  ;;  %1128 = vmatprep.mubr.bf16.mxu0 %v2061_v44  ;;  %v2136_v40 = vld [vmem:[%s2300_s6 + $0xb0] ss:$36 sps:$4 sm:$0xff]   ;;  %v2134_v41 = vld [vmem:[%s2484_s1 + $0x238] sm:$0xff]  }
  0x2c   : > { %1193 = vmatprep.mubr.bf16.mxu1 %v2063_v45 }
  0x2d   : > { %1861 = vmatpush3.bf16.msra.mxu0 %v2059_v42  ;;  %v2137_v42 = vld [vmem:[%s2300_s6 + $0x68] ss:$36 sps:$4 sm:$0xff]  }
  0x2e   : > { %1901 = vmatpush3.bf16.msra.mxu1 %v2060_v43  ;;  %1862 = vmatprep.subr.bf16.mxu0 %v2067_v48  ;;  %v2138_v43 = vld [vmem:[%s2300_s6 + $0xf8] ss:$36 sps:$4 sm:$0xff]  }
  0x2f   : > { %1902 = vmatprep.subr.bf16.mxu1 %v2068_v49 }
  0x30   : > { %1129 = vmatmul.mubr.bf16.gmra.mrb[4].mxu0 %v2065_v46 }
  0x31   : > { %1194 = vmatmul.mubr.bf16.gmra.mrb[4].mxu1 %v2066_v47  ;;  %1863 = vmatpush3.bf16.msra.mxu0 %v2069_v50 }
  0x32   : > { %1903 = vmatpush3.bf16.msra.mxu1 %v2070_v51  ;;  %1864 = vmatprep.subr.bf16.mxu0 %v2071_v52 }
  0x33   : > { %1904 = vmatprep.subr.bf16.mxu1 %v2072_v53  ;;  %1136 = vmatprep.mubr.bf16.mxu0 %v2075_v56 }
  0x34   : > { %1201 = vmatprep.mubr.bf16.mxu1 %v2077_v57 }
  0x35   : > { %1865 = vmatpush3.bf16.msra.mxu0 %v2073_v54 }
  0x36   : > { %1905 = vmatpush3.bf16.msra.mxu1 %v2074_v55  ;;  %1866 = vmatprep.subr.bf16.mxu0 %v2081_v60 }
  0x37   : > { %1906 = vmatprep.subr.bf16.mxu1 %v2082_v61 }
  0x38   : > { %1137 = vmatmul.mubr.bf16.gmra.mrb[8].mxu0 %v2079_v58 }
  0x39   : > { %1202 = vmatmul.mubr.bf16.gmra.mrb[8].mxu1 %v2080_v59  ;;  %1867 = vmatpush3.bf16.msra.mxu0 %v2083_v62 }
  0x3a   : > { %1907 = vmatpush3.bf16.msra.mxu1 %v2084_v63  ;;  %1868 = vmatprep.subr.bf16.mxu0 %v2085_v0 }
  0x3b   : > { %1908 = vmatprep.subr.bf16.mxu1 %v2086_v1  ;;  %1144 = vmatprep.mubr.bf16.mxu0 %v2089_v4 }
  0x3c   : > { %1209 = vmatprep.mubr.bf16.mxu1 %v2091_v5 }
  0x3d   : > { %1869 = vmatpush3.bf16.msra.mxu0 %v2087_v2 }
  0x3e   : > { %1909 = vmatpush3.bf16.msra.mxu1 %v2088_v3  ;;  %1870 = vmatprep.subr.bf16.mxu0 %v2095_v8 }
  0x3f   : > { %1910 = vmatprep.subr.bf16.mxu1 %v2096_v9 }
  0x40   : > { %1145 = vmatmul.mubr.bf16.gmra.mrb[12].mxu0 %v2093_v6 }
  0x41   : > { %1210 = vmatmul.mubr.bf16.gmra.mrb[12].mxu1 %v2094_v7  ;;  %1871 = vmatpush3.bf16.msra.mxu0 %v2097_v10 }
  0x42   : > { %1911 = vmatpush3.bf16.msra.mxu1 %v2098_v11  ;;  %1872 = vmatprep.subr.bf16.mxu0 %v2099_v12 }
  0x43   : > { %1912 = vmatprep.subr.bf16.mxu1 %v2100_v13  ;;  %1250 = vmatprep.mubr.bf16.mxu0 %v2105_v17 }
  0x44   : > { %1315 = vmatprep.mubr.bf16.mxu1 %v2108_v19 }
  0x45   : > { %1873 = vmatpush3.bf16.msra.mxu0 %v2101_v14 }
  0x46   : > { %1913 = vmatpush3.bf16.msra.mxu1 %v2102_v15  ;;  %1950 = vmatprep.subr.bf16.mxu0 %v2109_v20 }
  0x47   : > { %1974 = vmatprep.subr.bf16.mxu1 %v2109_v20 }
  0x48   : > { %1251 = vmatmul.mubr.bf16.vlgmr.msra.gmra.mrb[16].mxu0 %v2103_v16 }
  0x49   : > { %1316 = vmatmul.mubr.bf16.vlgmr.msra.gmra.mrb[16].mxu1 %v2106_v18  ;;  %1951 = vmatpush3.bf16.msra.mxu0 %v2109_v20 }
  0x4a   : > { %1982 = vmatpush3.bf16.msra.mxu1 %v2109_v20  ;;  %1952 = vmatprep.subr.bf16.mxu0 %v2110_v21 }
  0x4b   : > { %1975 = vmatprep.subr.bf16.mxu1 %v2110_v21  ;;  %1258 = vmatprep.mubr.bf16.mxu0 %v2111_v22 }
  0x4c   : > { %1323 = vmatprep.mubr.bf16.mxu1 %v2113_v23 }
  0x4d   : > { %1953 = vmatpush3.bf16.msra.mxu0 %v2110_v21 }
  0x4e   : > { %1983 = vmatpush3.bf16.msra.mxu1 %v2110_v21  ;;  %1954 = vmatprep.subr.bf16.mxu0 %v2117_v26 }
  0x4f   : > { %1976 = vmatprep.subr.bf16.mxu1 %v2117_v26 }
  0x50   : > { %1259 = vmatmul.mubr.bf16.gmra.mrb[20].mxu0 %v2115_v24 }
  0x51   : > { %1324 = vmatmul.mubr.bf16.gmra.mrb[20].mxu1 %v2116_v25  ;;  %1266 = vmatprep.mubr.bf16.mxu0 %v2119_v27 }
  0x52   : > { %1955 = vmatpush3.bf16.msra.mxu0 %v2117_v26  ;;  %1331 = vmatprep.mubr.bf16.mxu1 %v2121_v28 }
  0x53   : > { %1984 = vmatpush3.bf16.msra.mxu1 %v2117_v26  ;;  %1956 = vmatprep.subr.bf16.mxu0 %v2118_v29 }
  0x54   : > { %1977 = vmatprep.subr.bf16.mxu1 %v2118_v29 }
  0x56   : > { %1957 = vmatpush3.bf16.msra.mxu0 %v2118_v29 }
  0x57   : > { %1985 = vmatpush3.bf16.msra.mxu1 %v2118_v29  ;;  %1958 = vmatprep.subr.bf16.mxu0 %v2125_v32 }
  0x58   : > { %1267 = vmatmul.mubr.bf16.gmra.mrb[24].mxu0 %v2123_v30  ;;  %1978 = vmatprep.subr.bf16.mxu1 %v2125_v32 }
  0x59   : > { %1332 = vmatmul.mubr.bf16.gmra.mrb[24].mxu1 %v2124_v31  ;;  %1274 = vmatprep.mubr.bf16.mxu0 %v2127_v33 }
  0x5a   : > { %1959 = vmatpush3.bf16.msra.mxu0 %v2125_v32  ;;  %1339 = vmatprep.mubr.bf16.mxu1 %v2129_v34 }
  0x5b   : > { %1986 = vmatpush3.bf16.msra.mxu1 %v2125_v32  ;;  %1960 = vmatprep.subr.bf16.mxu0 %v2126_v35 }
  0x5c   : > { %1979 = vmatprep.subr.bf16.mxu1 %v2126_v35 }
  0x5e   : > { %1961 = vmatpush3.bf16.msra.mxu0 %v2126_v35 }
  0x5f   : > { %1987 = vmatpush3.bf16.msra.mxu1 %v2126_v35  ;;  %1962 = vmatprep.subr.bf16.mxu0 %v2133_v37 }
  0x60   : > { %1275 = vmatmul.mubr.bf16.gmra.mrb[28].mxu0 %v2131_v36  ;;  %1980 = vmatprep.subr.bf16.mxu1 %v2133_v37 }
  0x61   : > { %1340 = vmatmul.mubr.bf16.gmra.mrb[28].mxu1 %v2132_v38  ;;  %1966 = vmatprep.mubr.bf16.mxu0 %v2135_v39 }
  0x62   : > { %1963 = vmatpush3.bf16.msra.mxu0 %v2133_v37  ;;  %1970 = vmatprep.mubr.bf16.mxu1 %v2136_v40 }
  0x63   : > { %1988 = vmatpush3.bf16.msra.mxu1 %v2133_v37  ;;  %1964 = vmatprep.subr.bf16.mxu0 %v2134_v41 }
  0x64   : > { %1981 = vmatprep.subr.bf16.mxu1 %v2134_v41 }
  0x66   : > { %1965 = vmatpush3.bf16.msra.mxu0 %v2134_v41 }
  0x67   : > { %1989 = vmatpush3.bf16.msra.mxu1 %v2134_v41 }
  0x69   : > { %1967 = vmatmul.mubr.bf16.vlgmr.msra.gmra.mrb[32].mxu0 %v2137_v42 }
  0x6a   : > { %1971 = vmatmul.mubr.bf16.vlgmr.msra.gmra.mrb[32].mxu1 %v2138_v43 }
  0xfb   : > { %v1794_v44 = vpop.f32.mrb[0].mxu0 }
  0xfc   : > { %v1834_v45 = vpop.f32.mrb[0].mxu1  ;;  %v1795_v46 = vpop.f32.mrb[1].mxu0 }
  0xfd   : > { %v1796_v47 = vadd.f32 %v1795_v46, %v1794_v44  ;;  %v1835_v48 = vpop.f32.mrb[1].mxu1  ;;  %v1797_v49 = vpop.f32.mrb[2].mxu0 }
  0xfe   : > { %v1836_v50 = vadd.f32 %v1835_v48, %v1834_v45  ;;  %v1837_v51 = vpop.f32.mrb[2].mxu1  ;;  %v1798_v52 = vpop.f32.mrb[3].mxu0 }
  0xff   : > { %v1799_v53 = vadd.f32 %v1798_v52, %v1797_v49  ;;  %v1838_v54 = vpop.f32.mrb[3].mxu1 }
 0x100   : > { %v1188_v55 = vadd.f32 %v1836_v50, %v1796_v47  ;;  %v1839_v56 = vadd.f32 %v1838_v54, %v1837_v51 }
 0x102   : > { %v1191_v57 = vadd.f32 %v1839_v56, %v1799_v53 }
 0x103   : > { %v1800_v58 = vpop.f32.mrb[4].mxu0 }
 0x104   : > { %v1840_v59 = vpop.f32.mrb[4].mxu1  ;;  %v1801_v60 = vpop.f32.mrb[5].mxu0 }
 0x105   : > { %v1802_v61 = vadd.f32 %v1801_v60, %v1800_v58  ;;  %v1841_v62 = vpop.f32.mrb[5].mxu1  ;;  %v1803_v63 = vpop.f32.mrb[6].mxu0 }
 0x106   : > { %v1842_v0 = vadd.f32 %v1841_v62, %v1840_v59  ;;  %v1843_v1 = vpop.f32.mrb[6].mxu1  ;;  %v1804_v2 = vpop.f32.mrb[7].mxu0 }
 0x107   : > { %v1805_v3 = vadd.f32 %v1804_v2, %v1803_v63  ;;  %v1844_v4 = vpop.f32.mrb[7].mxu1 }
 0x108   : > { %v1196_v5 = vadd.f32 %v1842_v0, %v1802_v61  ;;  %v1845_v6 = vadd.f32 %v1844_v4, %v1843_v1 }
 0x10a   : > { %v1199_v7 = vadd.f32 %v1845_v6, %v1805_v3 }
 0x10b   : > { %v1806_v8 = vpop.f32.mrb[8].mxu0 }
 0x10c   : > { %v1846_v9 = vpop.f32.mrb[8].mxu1  ;;  %v1807_v10 = vpop.f32.mrb[9].mxu0 }
 0x10d   : > { %v1808_v11 = vadd.f32 %v1807_v10, %v1806_v8  ;;  %v1847_v12 = vpop.f32.mrb[9].mxu1  ;;  %v1809_v13 = vpop.f32.mrb[10].mxu0 }
 0x10e   : > { %v1848_v14 = vadd.f32 %v1847_v12, %v1846_v9  ;;  %v1849_v15 = vpop.f32.mrb[10].mxu1  ;;  %v1810_v16 = vpop.f32.mrb[11].mxu0 }
 0x10f   : > { %v1811_v17 = vadd.f32 %v1810_v16, %v1809_v13  ;;  %v1850_v18 = vpop.f32.mrb[11].mxu1 }
 0x110   : > { %v1204_v19 = vadd.f32 %v1848_v14, %v1808_v11  ;;  %v1851_v20 = vadd.f32 %v1850_v18, %v1849_v15 }
 0x112   : > { %v1207_v21 = vadd.f32 %v1851_v20, %v1811_v17 }
 0x113   : > { %v1812_v22 = vpop.f32.mrb[12].mxu0 }
 0x114   : > { %v1852_v23 = vpop.f32.mrb[12].mxu1  ;;  %v1813_v24 = vpop.f32.mrb[13].mxu0 }
 0x115   : > { %v1853_v25 = vpop.f32.mrb[13].mxu1  ;;  %v1814_v26 = vadd.f32 %v1813_v24, %v1812_v22  ;;  %v1815_v28 = vpop.f32.mrb[14].mxu0 }
 0x116   : > { %v1854_v27 = vadd.f32 %v1853_v25, %v1852_v23  ;;  %v1855_v29 = vpop.f32.mrb[14].mxu1  ;;  %v1816_v30 = vpop.f32.mrb[15].mxu0 }
 0x117   : > { %v1856_v31 = vpop.f32.mrb[15].mxu1  ;;  %v1817_v33 = vadd.f32 %v1816_v30, %v1815_v28 }
 0x118   : > { %v1212_v32 = vadd.f32 %v1854_v27, %v1814_v26  ;;  %v1857_v34 = vadd.f32 %v1856_v31, %v1855_v29 }
 0x11a   : > { %v1215_v35 = vadd.f32 %v1857_v34, %v1817_v33 }
 0x11b   : > { %v1874_v36 = vpop.f32.mrb[16].mxu0 }
 0x11c   : > { %v1875_v37 = vpop.f32.mrb[17].mxu0  ;;  %v1914_v38 = vpop.f32.mrb[16].mxu1 }
 0x11d   : > { %v1876_v39 = vadd.f32 %v1875_v37, %v1874_v36  ;;  %v1877_v40 = vpop.f32.mrb[18].mxu0  ;;  %v1915_v41 = vpop.f32.mrb[17].mxu1 }
 0x11e   : > { %v1878_v42 = vpop.f32.mrb[19].mxu0  ;;  %v1916_v44 = vadd.f32 %v1915_v41, %v1914_v38  ;;  %v1917_v45 = vpop.f32.mrb[18].mxu1 }
 0x11f   : > { %v1253_v43 = vadd.f32 %v1876_v39, %v1188_v55  ;;  %v1879_v46 = vadd.f32 %v1878_v42, %v1877_v40  ;;  %v1918_v47 = vpop.f32.mrb[19].mxu1  ;;  %v1736_v39 = vld [vmem:[%s2485_s2] ss:$0 sm:$0xff] }
 0x120   : > { %v1919_v49 = vadd.f32 %v1918_v47, %v1917_v45 }
 0x121   : > { %v1256_v48 = vadd.f32 %v1879_v46, %v1191_v57  ;;  %v1318_v50 = vadd.f32 %v1916_v44, %v1253_v43 }
 0x123   : > { %v1880_v51 = vpop.f32.mrb[20].mxu0  ;;  %v2464_v52 = vadd.f32 %v1919_v49, %v1256_v48 }
 0x124   : > { %v1881_v53 = vpop.f32.mrb[21].mxu0  ;;  %v1920_v54 = vpop.f32.mrb[20].mxu1 }
 0x125   : > { %v1882_v56 = vadd.f32 %v1881_v53, %v1880_v51  ;;  %v1883_v58 = vpop.f32.mrb[22].mxu0  ;;  %v1921_v59 = vpop.f32.mrb[21].mxu1 }
 0x126   : > { %v1884_v60 = vpop.f32.mrb[23].mxu0  ;;  %v1922_v62 = vadd.f32 %v1921_v59, %v1920_v54  ;;  %v1923_v63 = vpop.f32.mrb[22].mxu1 }
 0x127   : > { %v1261_v61 = vadd.f32 %v1882_v56, %v1196_v5  ;;  %v1885_v55 = vadd.f32 %v1884_v60, %v1883_v58  ;;  %v1924_v0 = vpop.f32.mrb[23].mxu1 }
 0x128   : > { %v1925_v2 = vadd.f32 %v1924_v0, %v1923_v63 }
 0x129   : > { %v1264_v1 = vadd.f32 %v1885_v55, %v1199_v7  ;;  %v1326_v3 = vadd.f32 %v1922_v62, %v1261_v61 }
 0x12b   : > { %v1886_v57 = vpop.f32.mrb[24].mxu0  ;;  %v1329_v4 = vadd.f32 %v1925_v2, %v1264_v1 }
 0x12c   : > { %v1887_v6 = vpop.f32.mrb[25].mxu0  ;;  %v1926_v8 = vpop.f32.mrb[24].mxu1 }
 0x12d   : > { %v1888_v9 = vadd.f32 %v1887_v6, %v1886_v57  ;;  %v1889_v10 = vpop.f32.mrb[26].mxu0  ;;  %v1927_v11 = vpop.f32.mrb[25].mxu1 }
 0x12e   : > { %v1890_v12 = vpop.f32.mrb[27].mxu0  ;;  %v1928_v14 = vadd.f32 %v1927_v11, %v1926_v8  ;;  %v1929_v15 = vpop.f32.mrb[26].mxu1 }
 0x12f   : > { %v1269_v13 = vadd.f32 %v1888_v9, %v1204_v19  ;;  %v1891_v16 = vadd.f32 %v1890_v12, %v1889_v10  ;;  %v1930_v5 = vpop.f32.mrb[27].mxu1 }
 0x130   : > { %v1931_v18 = vadd.f32 %v1930_v5, %v1929_v15 }
 0x131   : > { %v1272_v17 = vadd.f32 %v1891_v16, %v1207_v21  ;;  %v1334_v20 = vadd.f32 %v1928_v14, %v1269_v13 }
 0x133   : > { %v1892_v22 = vpop.f32.mrb[28].mxu0  ;;  %v1337_v7 = vadd.f32 %v1931_v18, %v1272_v17 }
 0x134   : > { %v1893_v23 = vpop.f32.mrb[29].mxu0  ;;  %v1932_v24 = vpop.f32.mrb[28].mxu1 }
 0x135   : > { %v1894_v25 = vadd.f32 %v1893_v23, %v1892_v22  ;;  %v1895_v26 = vpop.f32.mrb[30].mxu0  ;;  %v1933_v27 = vpop.f32.mrb[29].mxu1 }
 0x136   : > { %v1896_v28 = vpop.f32.mrb[31].mxu0  ;;  %v1934_v30 = vadd.f32 %v1933_v27, %v1932_v24  ;;  %v1935_v31 = vpop.f32.mrb[30].mxu1 }
 0x137   : > { %v1277_v29 = vadd.f32 %v1894_v25, %v1212_v32  ;;  %v1897_v33 = vadd.f32 %v1896_v28, %v1895_v26  ;;  %v1936_v19 = vpop.f32.mrb[31].mxu1 }
 0x138   : > { %v1937_v36 = vadd.f32 %v1936_v19, %v1935_v31 }
 0x139   : > { %v1280_v34 = vadd.f32 %v1897_v33, %v1215_v35  ;;  %v1342_v37 = vadd.f32 %v1934_v30, %v1277_v29 }
 0x13b   : > { %v1345_v38 = vadd.f32 %v1937_v36, %v1280_v34 }
 0x13c   : > { %v1968_v21 = vpop.f32.mrb[32].mxu0 }
 0x13d   : > { %v1391_v40 = vadd.f32 %v1968_v21, %v1326_v3  ;;  %v1972_v41 = vpop.f32.mrb[32].mxu1  ;;  %v1382_v42 = vpop.f32.mrb[33].mxu0 }
 0x13e   : > { %v1407_v43 = vadd.f32 %v1972_v41, %v1342_v37  ;;  %v1383_v44 = vadd.f32 %v1382_v42, %v1318_v50  ;;  %v1398_v32 = vpop.f32.mrb[33].mxu1  ;;  %v1969_v45 = vpop.f32.mrb[34].mxu0 }
 0x13f   : > { %v1449_v46 = vadd.f32 %v1736_v39, %v1391_v40  ;;  %v1399_v47 = vadd.f32 %v1398_v32, %v1334_v20  ;;  %v1394_v48 = vadd.f32 %v1969_v45, %v1329_v4  ;;  %v1973_v35 = vpop.f32.mrb[34].mxu1  ;;  %v1385_v49 = vpop.f32.mrb[35].mxu0 }
 0x140   : > { %v1453_v51 = vadd.f32 %v1736_v39, %v1407_v43  ;;  %v1447_v53 = vadd.f32 %v1736_v39, %v1383_v44  ;;  %v1410_v54 = vadd.f32 %v1973_v35, %v1345_v38  ;;  %v1386_v56 = vadd.f32 %v1385_v49, %v2464_v52  ;;  %v1401_v58 = vpop.f32.mrb[35].mxu1 }
 0x141   : > { %v1451_v59 = vadd.f32 %v1736_v39, %v1399_v47  ;;  %v1450_v60 = vadd.f32 %v1736_v39, %v1394_v48  ;;  %v1402_v61 = vadd.f32 %v1401_v58, %v1337_v7  ;;  %v1457_v50 = vmax.f32 %v1449_v46, 0.0 }
 0x142   : > { %v1454_v62 = vadd.f32 %v1736_v39, %v1410_v54  ;;  %v1448_v63 = vadd.f32 %v1736_v39, %v1386_v56  ;;  %v1461_v1 = vmax.f32 %v1453_v51, 0.0  ;;  %v1455_v2 = vmax.f32 %v1447_v53, 0.0 }
 0x143   : > { %v1458_v55 = vmax.f32 %v1450_v60, 0.0  ;;  %v1452_v0 = vadd.f32 %v1736_v39, %v1402_v61  ;;  %v1459_v4 = vmax.f32 %v1451_v59, 0.0 }
 0x144   : > { %v1462_v3 = vmax.f32 %v1454_v62, 0.0  ;;  %v1456_v57 = vmax.f32 %v1448_v63, 0.0 }
 0x145   : > { %v1763_v52 = vpack.c.bf16 %v1458_v55, %v1457_v50  ;;  %v1460_v6 = vmax.f32 %v1452_v0, 0.0 }
 0x146   : > { %v1773_v8 = vpack.c.bf16 %v1462_v3, %v1461_v1  ;;  %v1758_v9 = vpack.c.bf16 %v1456_v57, %v1455_v2 }
 0x147   : > { %1775 = vst [vmem:[%s265_s7 + $0x8] sm:$0xff] %v1763_v52   ;;  %v1768_v10 = vpack.c.bf16 %v1460_v6, %v1459_v4 }
 0x148   : > { %1777 = vst [vmem:[%s265_s7 + $0x18] sm:$0xff] %v1773_v8   ;;  %1759 = vst [vmem:[%s265_s7] sm:$0xff] %v1758_v9  }
 0x149   : > { %1776 = vst [vmem:[%s265_s7 + $0x10] sm:$0xff] %v1768_v10  }
 0x14a PF: > { %s13_s14 = sadd.s32 1, %s2161_s14   ;;  %s2487_s12 = smov %s2157_s13 }
 0x14b   : > { %p10_p5 = scmp.ge.s32.totalorder %s13_s14, 4   ;;  %s2488_s13 = smov %s2490_s15 }
 0x14d   :  { %12 = sbr.rel (!%p10_p5) target bundleno = 2 (0x2), region = 76 }

// kernel: _forward_impl.6
= control target key start
LH: loop header
LB: loop body
LE: loop exit
PB: predicated region body
PF: predicated region fallthrough
CT: control target
= control target key end

     0   :  { %s1636_s12 = smov 0   ;;  %s1638_s13 = smov 0   ;;  %s1906_s0 = inlined_call_operand.vmem [shape: bf16[32,1152], index: 0, kind: input, shape index: {}]   ;;  %s1907_s1 = inlined_call_operand.vmem [shape: bf16[1152,128], index: 1, kind: input, shape index: {}]   ;;  %s1908_s2 = inlined_call_operand.vmem [shape: f32[1,128], index: 2, kind: input, shape index: {}]   ;;  %s1909_s3 = inlined_call_operand.vmem [shape: bf16[32,128], index: 3, kind: output, shape index: {}]  }
   0x1   :  { %s1640_s14 = smov 0  }
   0x2 LB: > { %s32_s15 = sadd.s32 1, %s1608_s13  ;;  %p1263_p0 = scmp.ge.s32.totalorder %s1612_s14, 1  ;;  %s1612_s14 = sphi %s1640_s14, %s13_s14   ;;  %s1608_s13 = sphi %s1638_s13, %s1911_s13   ;;  %s1604_s12 = sphi %s1636_s12, %s1910_s12  }
   0x3   : > { %p34_p1 = scmp.ge.s32.totalorder %s32_s15, 2  ;;  %p191_p2 = scmp.lt.s32.totalorder %s1612_s14, 3 }
   0x5   : > { %s1913_s15 = smov (%p34_p1, %s32_s15), 0  ;;  %p192_p3 = pnand %p1263_p0, %p191_p2 }
   0x6   : > { %v1505_v0 = vld [vmem:[%s1907_s1 + $0x40] sm:$0xff] (!%p192_p3)   ;;  %v1509_v4 = vld [vmem:[%s1907_s1 + $0x48] sm:$0xff] (!%p192_p3)   ;;  %v1513_v8 = vld [vmem:[%s1907_s1 + $0x50] sm:$0xff] (!%p192_p3)   ;;  %s1264_s23 = sshll.u32 (!%p192_p3), %s1604_s12, 1  ;;  %vm1615_vm0 = vmmov (!%p192_p3), 0  }
   0x7   : > { %195 = sbr.rel (%p192_p3) target bundleno = 327 (0x147), region = 32  ;;  %v1506_v1 = vld [vmem:[%s1907_s1 + $0xc0] sm:$0xff] (!%p192_p3)   ;;  %1361 = vmatprep.subr.bf16.mxu0 (!%p192_p3), %v1505_v0  ;;  %v1510_v5 = vld [vmem:[%s1907_s1 + $0xc8] sm:$0xff] (!%p192_p3)   ;;  %v1514_v9 = vld [vmem:[%s1907_s1 + $0xd0] sm:$0xff] (!%p192_p3)   ;;  %p236_p4 = scmp.lt.s32.totalorder (!%p192_p3), %s1264_s23, 3 }
   0x8   : > { %v1507_v2 = vld [vmem:[%s1907_s1] sm:$0xff] (!%p192_p3)   ;;  %1383 = vmatprep.subr.bf16.mxu1 (!%p192_p3), %v1506_v1  ;;  %v1511_v6 = vld [vmem:[%s1907_s1 + $0x8] sm:$0xff] (!%p192_p3)   ;;  %v1515_v10 = vld [vmem:[%s1907_s1 + $0x10] sm:$0xff] (!%p192_p3)  }
   0x9   : > { %v1508_v3 = vld [vmem:[%s1907_s1 + $0x80] sm:$0xff] (!%p192_p3)   ;;  %1362 = vmatpush3.bf16.msra.mxu0 (!%p192_p3), %v1507_v2  ;;  %v1512_v7 = vld [vmem:[%s1907_s1 + $0x88] sm:$0xff] (!%p192_p3)   ;;  %v1516_v11 = vld [vmem:[%s1907_s1 + $0x90] sm:$0xff] (!%p192_p3)  }
   0xa   : > { %1384 = vmatpush3.bf16.msra.mxu1 (!%p192_p3), %v1508_v3  ;;  %1363 = vmatprep.subr.bf16.mxu0 (!%p192_p3), %v1509_v4  ;;  %v1517_v12 = vld [vmem:[%s1907_s1 + $0x58] sm:$0xff] (!%p192_p3)   ;;  %v1521_v16 = vld [vmem:[%s1907_s1 + $0x60] sm:$0xff] (!%p192_p3)   ;;  %v1525_v20 = vld [vmem:[%s1907_s1 + $0x68] sm:$0xff] (!%p192_p3)  }
   0xb   : > { %1385 = vmatprep.subr.bf16.mxu1 (!%p192_p3), %v1510_v5  ;;  %v1518_v13 = vld [vmem:[%s1907_s1 + $0xd8] sm:$0xff] (!%p192_p3)   ;;  %v1522_v17 = vld [vmem:[%s1907_s1 + $0xe0] sm:$0xff] (!%p192_p3)   ;;  %v1526_v21 = vld [vmem:[%s1907_s1 + $0xe8] sm:$0xff] (!%p192_p3)  }
   0xc   : > { %v1519_v14 = vld [vmem:[%s1907_s1 + $0x18] sm:$0xff] (!%p192_p3)   ;;  %v1523_v18 = vld [vmem:[%s1907_s1 + $0x20] sm:$0xff] (!%p192_p3)   ;;  %v1527_v22 = vld [vmem:[%s1907_s1 + $0x28] sm:$0xff] (!%p192_p3)  }
   0xd   : > { %1364 = vmatpush3.bf16.msra.mxu0 (!%p192_p3), %v1511_v6  ;;  %v1520_v15 = vld [vmem:[%s1907_s1 + $0x98] sm:$0xff] (!%p192_p3)   ;;  %v1524_v19 = vld [vmem:[%s1907_s1 + $0xa0] sm:$0xff] (!%p192_p3)   ;;  %v1528_v23 = vld [vmem:[%s1907_s1 + $0xa8] sm:$0xff] (!%p192_p3)   ;;  %v1614_v6 = vmov (!%p192_p3), 0.0  }
   0xe   : > { %1386 = vmatpush3.bf16.msra.mxu1 %v1512_v7  ;;  %1365 = vmatprep.subr.bf16.mxu0 %v1513_v8  ;;  %s1915_s23 = smov (!%p236_p4, %s1264_s23), 3  ;;  %v1529_v24 = vld [vmem:[%s1907_s1 + $0x70] sm:$0xff]   ;;  %v1533_v28 = vld [vmem:[%s1907_s1 + $0x78] sm:$0xff]   ;;  %v1543_v36 = vld [vmem:[%s1907_s1 + $0x140] sm:$0xff]  }
   0xf   : > { %1387 = vmatprep.subr.bf16.mxu1 %v1514_v9  ;;  %v1530_v25 = vld [vmem:[%s1907_s1 + $0xf0] sm:$0xff]   ;;  %s1478_s22 = smul.u32 36, %s1915_s23  ;;  %v1534_v29 = vld [vmem:[%s1907_s1 + $0xf8] sm:$0xff]   ;;  %v1544_v37 = vld [vmem:[%s1907_s1 + $0x100] sm:$0xff]   ;;  %s1267_s4 = sshll.u32 %s1915_s23, 2 }
  0x10   : > { %v1531_v26 = vld [vmem:[%s1907_s1 + $0x30] sm:$0xff]   ;;  %v1535_v30 = vld [vmem:[%s1907_s1 + $0x38] sm:$0xff]   ;;  %v1545_v38 = vld [vmem:[%s1907_s1 + $0x1c0] sm:$0xff]   ;;  %s265_s7 = scalar_lea.vmem %s1909_s3, %s1267_s4 }
  0x11   : > { %1366 = vmatpush3.bf16.msra.mxu0 %v1515_v10  ;;  %v1532_v27 = vld [vmem:[%s1907_s1 + $0xb0] sm:$0xff]   ;;  %s1753_s6 = scalar_lea.vmem %s1906_s0, %s1478_s22  ;;  %v1536_v31 = vld [vmem:[%s1907_s1 + $0xb8] sm:$0xff]   ;;  %v1546_v39 = vld [vmem:[%s1907_s1 + $0x180] sm:$0xff]  }
  0x12   : > { %1388 = vmatpush3.bf16.msra.mxu1 %v1516_v11  ;;  %1367 = vmatprep.subr.bf16.mxu0 %v1517_v12  ;;  %v1537_v32 = vld [vmem:[%s1753_s6] ss:$36 sps:$4 sm:$0xff]   ;;  %v1540_v34 = vld [vmem:[%s1753_s6 + $0x8] ss:$36 sps:$4 sm:$0xff]   ;;  %v1551_v44 = vld [vmem:[%s1907_s1 + $0x150] sm:$0xff]  }
  0x13   : > { %1389 = vmatprep.subr.bf16.mxu1 %v1518_v13  ;;  %v1539_v33 = vld [vmem:[%s1753_s6 + $0x4] ss:$36 sps:$4 sm:$0xff]   ;;  %v1542_v35 = vld [vmem:[%s1753_s6 + $0xc] ss:$36 sps:$4 sm:$0xff]   ;;  %v1555_v48 = vld [vmem:[%s1907_s1 + $0x158] sm:$0xff]  }
  0x14   : > { %940 = vmatprep.mubr.bf16.mxu0 %v1539_v33  ;;  %981 = vmatprep.mubr.bf16.mxu1 %v1542_v35  ;;  %v1547_v40 = vld [vmem:[%s1907_s1 + $0x148] sm:$0xff]   ;;  %v1552_v45 = vld [vmem:[%s1907_s1 + $0x110] sm:$0xff]   ;;  %v1556_v49 = vld [vmem:[%s1907_s1 + $0x118] sm:$0xff]  }
  0x15   : > { %1368 = vmatpush3.bf16.msra.mxu0 %v1519_v14  ;;  %v1548_v41 = vld [vmem:[%s1907_s1 + $0x108] sm:$0xff]   ;;  %v1553_v46 = vld [vmem:[%s1907_s1 + $0x1d0] sm:$0xff]   ;;  %v1557_v50 = vld [vmem:[%s1907_s1 + $0x1d8] sm:$0xff]  }
  0x16   : > { %1390 = vmatpush3.bf16.msra.mxu1 %v1520_v15  ;;  %1369 = vmatprep.subr.bf16.mxu0 %v1521_v16  ;;  %v1549_v42 = vld [vmem:[%s1907_s1 + $0x1c8] sm:$0xff]   ;;  %v1554_v47 = vld [vmem:[%s1907_s1 + $0x190] sm:$0xff]   ;;  %v1558_v51 = vld [vmem:[%s1907_s1 + $0x198] sm:$0xff]  }
  0x17   : > { %1391 = vmatprep.subr.bf16.mxu1 %v1522_v17  ;;  %v1550_v43 = vld [vmem:[%s1907_s1 + $0x188] sm:$0xff]   ;;  %v1559_v52 = vld [vmem:[%s1907_s1 + $0x160] sm:$0xff]   ;;  %v1567_v60 = vld [vmem:[%s1907_s1 + $0x170] sm:$0xff]  }
  0x18   : > { %v1560_v53 = vld [vmem:[%s1907_s1 + $0x120] sm:$0xff]   ;;  %v1563_v56 = vld [vmem:[%s1907_s1 + $0x168] sm:$0xff]   ;;  %v1568_v61 = vld [vmem:[%s1907_s1 + $0x130] sm:$0xff]  }
  0x19   : > { %1370 = vmatpush3.bf16.msra.mxu0 %v1523_v18  ;;  %v1561_v54 = vld [vmem:[%s1907_s1 + $0x1e0] sm:$0xff]   ;;  %v1564_v57 = vld [vmem:[%s1907_s1 + $0x128] sm:$0xff]   ;;  %v1569_v62 = vld [vmem:[%s1907_s1 + $0x1f0] sm:$0xff]  }
  0x1a   : > { %1392 = vmatpush3.bf16.msra.mxu1 %v1524_v19  ;;  %1371 = vmatprep.subr.bf16.mxu0 %v1525_v20  ;;  %v1562_v55 = vld [vmem:[%s1907_s1 + $0x1a0] sm:$0xff]   ;;  %v1565_v58 = vld [vmem:[%s1907_s1 + $0x1e8] sm:$0xff]   ;;  %v1570_v63 = vld [vmem:[%s1907_s1 + $0x1b0] sm:$0xff]  }
  0x1b   : > { %1393 = vmatprep.subr.bf16.mxu1 %v1526_v21  ;;  %v1566_v59 = vld [vmem:[%s1907_s1 + $0x1a8] sm:$0xff]   ;;  %v1571_v0 = vld [vmem:[%s1907_s1 + $0x178] sm:$0xff]   ;;  %v1574_v3 = vld [vmem:[%s1753_s6 + $0x10] ss:$36 sps:$4 sm:$0xff]  }
  0x1c   : > { %v1572_v1 = vld [vmem:[%s1907_s1 + $0x138] sm:$0xff]   ;;  %v1581_v9 = vld [vmem:[%s1907_s1 + $0x200] sm:$0xff]   ;;  %v1582_v10 = vld [vmem:[%s1907_s1 + $0x208] sm:$0xff]  }
  0x1d   : > { %1372 = vmatpush3.bf16.msra.mxu0 %v1527_v22  ;;  %v1573_v2 = vld [vmem:[%s1907_s1 + $0x1f8] sm:$0xff]   ;;  %v1583_v11 = vld [vmem:[%s1907_s1 + $0x210] sm:$0xff]   ;;  %v1585_v13 = vld [vmem:[%s1907_s1 + $0x220] sm:$0xff]  }
  0x1e   : > { %1394 = vmatpush3.bf16.msra.mxu1 %v1528_v23  ;;  %1373 = vmatprep.subr.bf16.mxu0 %v1529_v24  ;;  %v1576_v4 = vld [vmem:[%s1753_s6 + $0x14] ss:$36 sps:$4 sm:$0xff]   ;;  %v1580_v8 = vld [vmem:[%s1753_s6 + $0x1c] ss:$36 sps:$4 sm:$0xff]   ;;  %v1586_v14 = vld [vmem:[%s1907_s1 + $0x228] sm:$0xff]  }
  0x1f   : > { %1395 = vmatprep.subr.bf16.mxu1 %v1530_v25  ;;  %v1577_v5 = vld [vmem:[%s1907_s1 + $0x1b8] sm:$0xff]   ;;  %v1587_v15 = vld [vmem:[%s1907_s1 + $0x230] sm:$0xff]   ;;  %v1589_v17 = vld [vmem:[%s1753_s6 + $0x20] ss:$36 sps:$4 sm:$0xff]  }
  0x20   : > { %v1578_v7 = vld [vmem:[%s1753_s6 + $0x18] ss:$36 sps:$4 sm:$0xff]  }
  0x21   : > { %1374 = vmatpush3.bf16.msra.mxu0 %v1531_v26  ;;  %v1584_v12 = vld [vmem:[%s1907_s1 + $0x218] sm:$0xff]  }
  0x22   : > { %1396 = vmatpush3.bf16.msra.mxu1 %v1532_v27  ;;  %1375 = vmatprep.subr.bf16.mxu0 %v1533_v28  ;;  %v1588_v16 = vld [vmem:[%s1907_s1 + $0x238] sm:$0xff]  }
  0x23   : > { %1397 = vmatprep.subr.bf16.mxu1 %v1534_v29 }
  0x25   : > { %1376 = vmatpush3.bf16.msra.mxu0 %v1535_v30 }
  0x26   : > { %1398 = vmatpush3.bf16.msra.mxu1 %v1536_v31  ;;  %1405 = vmatprep.subr.bf16.mxu0 %v1543_v36 }
  0x27   : > { %1427 = vmatprep.subr.bf16.mxu1 %v1545_v38 }
  0x28   : > { %941 = vmatmul.mubr.bf16.vlgmr.msra.gmra.mrb[0].mxu0 %v1537_v32 }
  0x29   : > { %982 = vmatmul.mubr.bf16.vlgmr.msra.gmra.mrb[0].mxu1 %v1540_v34  ;;  %1406 = vmatpush3.bf16.msra.mxu0 %v1544_v37 }
  0x2a   : > { %1428 = vmatpush3.bf16.msra.mxu1 %v1546_v39  ;;  %1407 = vmatprep.subr.bf16.mxu0 %v1547_v40 }
  0x2b   : > { %1429 = vmatprep.subr.bf16.mxu1 %v1549_v42  ;;  %1022 = vmatprep.mubr.bf16.mxu0 %v1576_v4 }
  0x2c   : > { %1063 = vmatprep.mubr.bf16.mxu1 %v1580_v8 }
  0x2d   : > { %1408 = vmatpush3.bf16.msra.mxu0 %v1548_v41 }
  0x2e   : > { %1430 = vmatpush3.bf16.msra.mxu1 %v1550_v43  ;;  %1409 = vmatprep.subr.bf16.mxu0 %v1551_v44 }
  0x2f   : > { %1431 = vmatprep.subr.bf16.mxu1 %v1553_v46 }
  0x31   : > { %1410 = vmatpush3.bf16.msra.mxu0 %v1552_v45 }
  0x32   : > { %1432 = vmatpush3.bf16.msra.mxu1 %v1554_v47  ;;  %1411 = vmatprep.subr.bf16.mxu0 %v1555_v48 }
  0x33   : > { %1433 = vmatprep.subr.bf16.mxu1 %v1557_v50 }
  0x35   : > { %1412 = vmatpush3.bf16.msra.mxu0 %v1556_v49  ;;  %v1349_v49 = vld [vmem:[%s1908_s2] ss:$0 sm:$0xff] }
  0x36   : > { %1434 = vmatpush3.bf16.msra.mxu1 %v1558_v51  ;;  %1413 = vmatprep.subr.bf16.mxu0 %v1559_v52 }
  0x37   : > { %1435 = vmatprep.subr.bf16.mxu1 %v1561_v54 }
  0x39   : > { %1414 = vmatpush3.bf16.msra.mxu0 %v1560_v53 }
  0x3a   : > { %1436 = vmatpush3.bf16.msra.mxu1 %v1562_v55  ;;  %1415 = vmatprep.subr.bf16.mxu0 %v1563_v56 }
  0x3b   : > { %1437 = vmatprep.subr.bf16.mxu1 %v1565_v58 }
  0x3d   : > { %1416 = vmatpush3.bf16.msra.mxu0 %v1564_v57 }
  0x3e   : > { %1438 = vmatpush3.bf16.msra.mxu1 %v1566_v59  ;;  %1417 = vmatprep.subr.bf16.mxu0 %v1567_v60 }
  0x3f   : > { %1439 = vmatprep.subr.bf16.mxu1 %v1569_v62 }
  0x41   : > { %1418 = vmatpush3.bf16.msra.mxu0 %v1568_v61 }
  0x42   : > { %1440 = vmatpush3.bf16.msra.mxu1 %v1570_v63  ;;  %1419 = vmatprep.subr.bf16.mxu0 %v1571_v0 }
  0x43   : > { %1441 = vmatprep.subr.bf16.mxu1 %v1573_v2 }
  0x45   : > { %1420 = vmatpush3.bf16.msra.mxu0 %v1572_v1 }
  0x46   : > { %1458 = vmatprep.subr.bf16.mxu0 %v1614_v6  ;;  %1442 = vmatpush3.bf16.msra.mxu1 %v1577_v5 }
  0x48   : > { %1023 = vmatmul.mubr.bf16.vlgmr.msra.gmra.mrb[4].mxu0 %v1574_v3 }
  0x49   : > { %1474 = vmatprep.mubr.msk.bf16.mxu0 %vm1615_vm0, %v1614_v6  ;;  %1459 = vmatpush3.bf16.msra.mxu0 %v1581_v9 }
  0x4a   : > { %1064 = vmatmul.mubr.bf16.vlgmr.msra.gmra.mrb[4].mxu1 %v1578_v7  ;;  %1460 = vmatprep.subr.bf16.mxu0 %v1614_v6 }
  0x4d   : > { %1461 = vmatpush3.bf16.msra.mxu0 %v1582_v10 }
  0x4e   : > { %1462 = vmatprep.subr.bf16.mxu0 %v1614_v6 }
  0x51   : > { %1463 = vmatpush3.bf16.msra.mxu0 %v1583_v11 }
  0x52   : > { %1464 = vmatprep.subr.bf16.mxu0 %v1614_v6 }
  0x55   : > { %1465 = vmatpush3.bf16.msra.mxu0 %v1584_v12 }
  0x56   : > { %1466 = vmatprep.subr.bf16.mxu0 %v1614_v6 }
  0x59   : > { %1467 = vmatpush3.bf16.msra.mxu0 %v1585_v13 }
  0x5a   : > { %1468 = vmatprep.subr.bf16.mxu0 %v1614_v6 }
  0x5d   : > { %1469 = vmatpush3.bf16.msra.mxu0 %v1586_v14 }
  0x5e   : > { %1470 = vmatprep.subr.bf16.mxu0 %v1614_v6 }
  0x61   : > { %1471 = vmatpush3.bf16.msra.mxu0 %v1587_v15 }
  0x62   : > { %1472 = vmatprep.subr.bf16.mxu0 %v1614_v6 }
  0x65   : > { %1473 = vmatpush3.bf16.msra.mxu0 %v1588_v16 }
  0x68   : > { %1475 = vmatmul.mubr.bf16.vlgmr.msra.gmra.mrb[8].mxu0 %v1589_v17 }
  0xfb   : > { %v1377_v18 = vpop.f32.mrb[0].mxu0 }
  0xfc   : > { %v1399_v19 = vpop.f32.mrb[0].mxu1  ;;  %v1378_v20 = vpop.f32.mrb[1].mxu0 }
  0xfd   : > { %v1379_v21 = vadd.f32 %v1378_v20, %v1377_v18  ;;  %v1400_v22 = vpop.f32.mrb[1].mxu1  ;;  %v1380_v23 = vpop.f32.mrb[2].mxu0 }
  0xfe   : > { %v1401_v24 = vadd.f32 %v1400_v22, %v1399_v19  ;;  %v1402_v25 = vpop.f32.mrb[2].mxu1  ;;  %v1381_v26 = vpop.f32.mrb[3].mxu0 }
  0xff   : > { %v1382_v27 = vadd.f32 %v1381_v26, %v1380_v23  ;;  %v1403_v28 = vpop.f32.mrb[3].mxu1 }
 0x100   : > { %v984_v29 = vadd.f32 %v1401_v24, %v1379_v21  ;;  %v1404_v30 = vadd.f32 %v1403_v28, %v1402_v25 }
 0x102   : > { %v987_v31 = vadd.f32 %v1404_v30, %v1382_v27 }
 0x11b   : > { %v1421_v32 = vpop.f32.mrb[4].mxu0 }
 0x11c   : > { %v1422_v33 = vpop.f32.mrb[5].mxu0 }
 0x11d   : > { %v1423_v34 = vadd.f32 %v1422_v33, %v1421_v32  ;;  %v1424_v35 = vpop.f32.mrb[6].mxu0  ;;  %v1443_v36 = vpop.f32.mrb[4].mxu1 }
 0x11e   : > { %v1425_v37 = vpop.f32.mrb[7].mxu0  ;;  %v1444_v40 = vpop.f32.mrb[5].mxu1 }
 0x11f   : > { %v1025_v38 = vadd.f32 %v1423_v34, %v984_v29  ;;  %v1426_v39 = vadd.f32 %v1425_v37, %v1424_v35  ;;  %v1445_v41 = vadd.f32 %v1444_v40, %v1443_v36  ;;  %v1446_v42 = vpop.f32.mrb[6].mxu1 }
 0x120   : > { %v1447_v44 = vpop.f32.mrb[7].mxu1 }
 0x121   : > { %v1028_v43 = vadd.f32 %v1426_v39, %v987_v31  ;;  %v1448_v45 = vadd.f32 %v1447_v44, %v1446_v42  ;;  %v1066_v46 = vadd.f32 %v1445_v41, %v1025_v38 }
 0x123   : > { %v1069_v47 = vadd.f32 %v1448_v45, %v1028_v43 }
 0x13b   : > { %v1106_v48 = vpop.f32.mrb[8].mxu0 }
 0x13c   : > { %v1107_v50 = vadd.f32 %v1106_v48, %v1066_v46  ;;  %v1476_v51 = vpop.f32.mrb[9].mxu0 }
 0x13d   : > { %v1109_v52 = vpop.f32.mrb[10].mxu0 }
 0x13e   : > { %v1129_v53 = vadd.f32 %v1349_v49, %v1107_v50  ;;  %v1110_v54 = vadd.f32 %v1109_v52, %v1069_v47  ;;  %v1477_v55 = vpop.f32.mrb[11].mxu0 }
 0x140   : > { %v1130_v56 = vadd.f32 %v1349_v49, %v1110_v54  ;;  %v1131_v57 = vmax.f32 %v1129_v53, 0.0 }
 0x142   : > { %v1132_v58 = vmax.f32 %v1130_v56, 0.0 }
 0x144   : > { %v1359_v59 = vpack.c.bf16 %v1132_v58, %v1131_v57 }
 0x146   : > { %1360 = vst [vmem:[%s265_s7] sm:$0xff] %v1359_v59  }
 0x147 PF: > { %s13_s14 = sadd.s32 1, %s1612_s14   ;;  %s1910_s12 = smov %s1608_s13 }
 0x148   : > { %p10_p5 = scmp.ge.s32.totalorder %s13_s14, 4   ;;  %s1911_s13 = smov %s1913_s15 }
 0x14a   :  { %12 = sbr.rel (!%p10_p5) target bundleno = 2 (0x2), region = 76 }

// kernel: _forward_impl.7
= control target key start
LH: loop header
LB: loop body
LE: loop exit
PB: predicated region body
PF: predicated region fallthrough
CT: control target
= control target key end

     0   :  { %vm1138_vm0 = vmmov 0   ;;  %s1396_s1 = inlined_call_operand.vmem [shape: bf16[1152,128], index: 1, kind: input, shape index: {}]   ;;  %s1397_s0 = inlined_call_operand.vmem [shape: bf16[8,1152], index: 0, kind: input, shape index: {}]   ;;  %s1398_s2 = inlined_call_operand.vmem [shape: f32[1,128], index: 2, kind: input, shape index: {}]   ;;  %s1399_s3 = inlined_call_operand.vmem [shape: bf16[8,128], index: 3, kind: output, shape index: {}]  }
   0x1   :  { %v1056_v0 = vld [vmem:[%s1396_s1 + $0x40] sm:$0xff]   ;;  %v1060_v4 = vld [vmem:[%s1396_s1 + $0x48] sm:$0xff]   ;;  %v1064_v8 = vld [vmem:[%s1396_s1 + $0x50] sm:$0xff]  }
   0x2   :  { %v1057_v1 = vld [vmem:[%s1396_s1 + $0xc0] sm:$0xff]   ;;  %937 = vmatprep.subr.bf16.mxu0 %v1056_v0  ;;  %v1061_v5 = vld [vmem:[%s1396_s1 + $0xc8] sm:$0xff]   ;;  %v1065_v9 = vld [vmem:[%s1396_s1 + $0xd0] sm:$0xff]  }
   0x3   :  { %v1058_v2 = vld [vmem:[%s1396_s1] sm:$0xff]   ;;  %959 = vmatprep.subr.bf16.mxu1 %v1057_v1  ;;  %v1062_v6 = vld [vmem:[%s1396_s1 + $0x8] sm:$0xff]   ;;  %v1066_v10 = vld [vmem:[%s1396_s1 + $0x10] sm:$0xff]  }
   0x4   :  { %v1059_v3 = vld [vmem:[%s1396_s1 + $0x80] sm:$0xff]   ;;  %938 = vmatpush3.bf16.msra.mxu0 %v1058_v2  ;;  %v1063_v7 = vld [vmem:[%s1396_s1 + $0x88] sm:$0xff]   ;;  %v1067_v11 = vld [vmem:[%s1396_s1 + $0x90] sm:$0xff]  }
   0x5   :  { %960 = vmatpush3.bf16.msra.mxu1 %v1059_v3  ;;  %939 = vmatprep.subr.bf16.mxu0 %v1060_v4  ;;  %v1068_v12 = vld [vmem:[%s1396_s1 + $0x58] sm:$0xff]   ;;  %v1072_v16 = vld [vmem:[%s1396_s1 + $0x60] sm:$0xff]   ;;  %v1076_v20 = vld [vmem:[%s1396_s1 + $0x68] sm:$0xff]  }
   0x6   :  { %961 = vmatprep.subr.bf16.mxu1 %v1061_v5  ;;  %v1069_v13 = vld [vmem:[%s1396_s1 + $0xd8] sm:$0xff]   ;;  %v1073_v17 = vld [vmem:[%s1396_s1 + $0xe0] sm:$0xff]   ;;  %v1077_v21 = vld [vmem:[%s1396_s1 + $0xe8] sm:$0xff]  }
   0x7   :  { %v1070_v14 = vld [vmem:[%s1396_s1 + $0x18] sm:$0xff]   ;;  %v1074_v18 = vld [vmem:[%s1396_s1 + $0x20] sm:$0xff]   ;;  %v1078_v22 = vld [vmem:[%s1396_s1 + $0x28] sm:$0xff]  }
   0x8   :  { %940 = vmatpush3.bf16.msra.mxu0 %v1062_v6  ;;  %v1071_v15 = vld [vmem:[%s1396_s1 + $0x98] sm:$0xff]   ;;  %v1075_v19 = vld [vmem:[%s1396_s1 + $0xa0] sm:$0xff]   ;;  %v1079_v23 = vld [vmem:[%s1396_s1 + $0xa8] sm:$0xff]  }
   0x9   :  { %962 = vmatpush3.bf16.msra.mxu1 %v1063_v7  ;;  %941 = vmatprep.subr.bf16.mxu0 %v1064_v8  ;;  %v1080_v24 = vld [vmem:[%s1396_s1 + $0x70] sm:$0xff]   ;;  %v1084_v28 = vld [vmem:[%s1396_s1 + $0x78] sm:$0xff]   ;;  %v21_v32 = vld [vmem:[%s1397_s0] sm:$0xff] }
   0xa   :  { %963 = vmatprep.subr.bf16.mxu1 %v1065_v9  ;;  %v1081_v25 = vld [vmem:[%s1396_s1 + $0xf0] sm:$0xff]   ;;  %v1085_v29 = vld [vmem:[%s1396_s1 + $0xf8] sm:$0xff]   ;;  %v22_v33 = vld [vmem:[%s1397_s0 + $0x8] sm:$0xff]  ;;  %v855_v34 = vcombine.low %v21_v32, %v21_v32  ;;  %v856_v35 = vcombine.high %v21_v32, %v21_v32 }
   0xb   :  { %v1082_v26 = vld [vmem:[%s1396_s1 + $0x30] sm:$0xff]   ;;  %v1086_v30 = vld [vmem:[%s1396_s1 + $0x38] sm:$0xff]   ;;  %v857_v36 = vcombine.low %v22_v33, %v22_v33  ;;  %v858_v37 = vcombine.high %v22_v33, %v22_v33  ;;  %v1092_v38 = vld [vmem:[%s1396_s1 + $0x140] sm:$0xff]  }
   0xc   :  { %942 = vmatpush3.bf16.msra.mxu0 %v1066_v10  ;;  %v1083_v27 = vld [vmem:[%s1396_s1 + $0xb0] sm:$0xff]   ;;  %v1087_v31 = vld [vmem:[%s1396_s1 + $0xb8] sm:$0xff]   ;;  %v1093_v39 = vld [vmem:[%s1396_s1 + $0x100] sm:$0xff]   ;;  %666 = vmatprep.mubr.bf16.mxu0 %v856_v35 }
   0xd   :  { %964 = vmatpush3.bf16.msra.mxu1 %v1067_v11  ;;  %943 = vmatprep.subr.bf16.mxu0 %v1068_v12  ;;  %v1094_v40 = vld [vmem:[%s1396_s1 + $0x1c0] sm:$0xff]   ;;  %v1096_v42 = vld [vmem:[%s1396_s1 + $0x148] sm:$0xff]   ;;  %v1100_v46 = vld [vmem:[%s1396_s1 + $0x150] sm:$0xff]  }
   0xe   :  { %965 = vmatprep.subr.bf16.mxu1 %v1069_v13  ;;  %706 = vmatprep.mubr.bf16.mxu1 %v858_v37  ;;  %v1095_v41 = vld [vmem:[%s1396_s1 + $0x180] sm:$0xff]   ;;  %v1097_v43 = vld [vmem:[%s1396_s1 + $0x108] sm:$0xff]   ;;  %v1101_v47 = vld [vmem:[%s1396_s1 + $0x110] sm:$0xff]   ;;  %v1137_v13 = vmov 0.0  }
   0xf   :  { %v1098_v44 = vld [vmem:[%s1396_s1 + $0x1c8] sm:$0xff]   ;;  %v1102_v48 = vld [vmem:[%s1396_s1 + $0x1d0] sm:$0xff]   ;;  %v1104_v50 = vld [vmem:[%s1396_s1 + $0x158] sm:$0xff]  }
  0x10   :  { %944 = vmatpush3.bf16.msra.mxu0 %v1070_v14  ;;  %v1099_v45 = vld [vmem:[%s1396_s1 + $0x188] sm:$0xff]   ;;  %v1103_v49 = vld [vmem:[%s1396_s1 + $0x190] sm:$0xff]   ;;  %v1105_v51 = vld [vmem:[%s1396_s1 + $0x118] sm:$0xff]  }
  0x11   :  { %966 = vmatpush3.bf16.msra.mxu1 %v1071_v15  ;;  %945 = vmatprep.subr.bf16.mxu0 %v1072_v16  ;;  %v1106_v52 = vld [vmem:[%s1396_s1 + $0x1d8] sm:$0xff]   ;;  %v1108_v54 = vld [vmem:[%s1396_s1 + $0x160] sm:$0xff]   ;;  %v1112_v58 = vld [vmem:[%s1396_s1 + $0x168] sm:$0xff]  }
  0x12   :  { %967 = vmatprep.subr.bf16.mxu1 %v1073_v17  ;;  %v1107_v53 = vld [vmem:[%s1396_s1 + $0x198] sm:$0xff]   ;;  %v1109_v55 = vld [vmem:[%s1396_s1 + $0x120] sm:$0xff]   ;;  %v1113_v59 = vld [vmem:[%s1396_s1 + $0x128] sm:$0xff]  }
  0x13   :  { %v1110_v56 = vld [vmem:[%s1396_s1 + $0x1e0] sm:$0xff]   ;;  %v1114_v60 = vld [vmem:[%s1396_s1 + $0x1e8] sm:$0xff]   ;;  %v1116_v62 = vld [vmem:[%s1396_s1 + $0x170] sm:$0xff]  }
  0x14   :  { %946 = vmatpush3.bf16.msra.mxu0 %v1074_v18  ;;  %v1111_v57 = vld [vmem:[%s1396_s1 + $0x1a0] sm:$0xff]   ;;  %v1115_v61 = vld [vmem:[%s1396_s1 + $0x1a8] sm:$0xff]   ;;  %v1117_v63 = vld [vmem:[%s1396_s1 + $0x130] sm:$0xff]  }
  0x15   :  { %968 = vmatpush3.bf16.msra.mxu1 %v1075_v19  ;;  %947 = vmatprep.subr.bf16.mxu0 %v1076_v20  ;;  %v1118_v0 = vld [vmem:[%s1396_s1 + $0x1f0] sm:$0xff]   ;;  %v1120_v2 = vld [vmem:[%s1396_s1 + $0x178] sm:$0xff]   ;;  %v1128_v12 = vld [vmem:[%s1396_s1 + $0x200] sm:$0xff]  }
  0x16   :  { %969 = vmatprep.subr.bf16.mxu1 %v1077_v21  ;;  %v1119_v1 = vld [vmem:[%s1396_s1 + $0x1b0] sm:$0xff]   ;;  %v1121_v3 = vld [vmem:[%s1396_s1 + $0x138] sm:$0xff]   ;;  %v1129_v14 = vld [vmem:[%s1396_s1 + $0x208] sm:$0xff]  }
  0x17   :  { %v1122_v4 = vld [vmem:[%s1396_s1 + $0x1f8] sm:$0xff]   ;;  %v23_v5 = vld [vmem:[%s1397_s0 + $0x10] sm:$0xff]  ;;  %v1132_v17 = vld [vmem:[%s1396_s1 + $0x220] sm:$0xff]  }
  0x18   :  { %948 = vmatpush3.bf16.msra.mxu0 %v1078_v22  ;;  %v860_v6 = vcombine.high %v23_v5, %v23_v5  ;;  %v1125_v7 = vld [vmem:[%s1396_s1 + $0x1b8] sm:$0xff]   ;;  %v859_v8 = vcombine.low %v23_v5, %v23_v5  ;;  %v1130_v15 = vld [vmem:[%s1396_s1 + $0x210] sm:$0xff]   ;;  %v1133_v18 = vld [vmem:[%s1396_s1 + $0x228] sm:$0xff]  }
  0x19   :  { %970 = vmatpush3.bf16.msra.mxu1 %v1079_v23  ;;  %949 = vmatprep.subr.bf16.mxu0 %v1080_v24  ;;  %v24_v9 = vld [vmem:[%s1397_s0 + $0x18] sm:$0xff]  ;;  %v1134_v19 = vld [vmem:[%s1396_s1 + $0x230] sm:$0xff]   ;;  %v1136_v21 = vld [vmem:[%s1397_s0 + $0x20] ss:$0 sps:$4 sm:$0xff]  }
  0x1a   :  { %971 = vmatprep.subr.bf16.mxu1 %v1081_v25  ;;  %v861_v10 = vcombine.low %v24_v9, %v24_v9  ;;  %v862_v11 = vcombine.high %v24_v9, %v24_v9  ;;  %v1131_v16 = vld [vmem:[%s1396_s1 + $0x218] sm:$0xff]  }
  0x1b   :  { %v1135_v20 = vld [vmem:[%s1396_s1 + $0x238] sm:$0xff]  }
  0x1c   :  { %950 = vmatpush3.bf16.msra.mxu0 %v1082_v26 }
  0x1d   :  { %972 = vmatpush3.bf16.msra.mxu1 %v1083_v27  ;;  %951 = vmatprep.subr.bf16.mxu0 %v1084_v28 }
  0x1e   :  { %973 = vmatprep.subr.bf16.mxu1 %v1085_v29 }
  0x20   :  { %952 = vmatpush3.bf16.msra.mxu0 %v1086_v30 }
  0x21   :  { %974 = vmatpush3.bf16.msra.mxu1 %v1087_v31  ;;  %981 = vmatprep.subr.bf16.mxu0 %v1092_v38 }
  0x22   :  { %1003 = vmatprep.subr.bf16.mxu1 %v1094_v40 }
  0x23   :  { %667 = vmatmul.mubr.bf16.vlgmr.msra.gmra.mrb[0].mxu0 %v855_v34 }
  0x24   :  { %707 = vmatmul.mubr.bf16.vlgmr.msra.gmra.mrb[0].mxu1 %v857_v36  ;;  %982 = vmatpush3.bf16.msra.mxu0 %v1093_v39 }
  0x25   :  { %1004 = vmatpush3.bf16.msra.mxu1 %v1095_v41  ;;  %983 = vmatprep.subr.bf16.mxu0 %v1096_v42 }
  0x26   :  { %1005 = vmatprep.subr.bf16.mxu1 %v1098_v44  ;;  %746 = vmatprep.mubr.bf16.mxu0 %v860_v6 }
  0x27   :  { %786 = vmatprep.mubr.bf16.mxu1 %v862_v11 }
  0x28   :  { %984 = vmatpush3.bf16.msra.mxu0 %v1097_v43 }
  0x29   :  { %1006 = vmatpush3.bf16.msra.mxu1 %v1099_v45  ;;  %985 = vmatprep.subr.bf16.mxu0 %v1100_v46  ;;  %v936_v46 = vld [vmem:[%s1398_s2] ss:$0 sm:$0xff] }
  0x2a   :  { %1007 = vmatprep.subr.bf16.mxu1 %v1102_v48 }
  0x2c   :  { %986 = vmatpush3.bf16.msra.mxu0 %v1101_v47 }
  0x2d   :  { %1008 = vmatpush3.bf16.msra.mxu1 %v1103_v49  ;;  %987 = vmatprep.subr.bf16.mxu0 %v1104_v50 }
  0x2e   :  { %1009 = vmatprep.subr.bf16.mxu1 %v1106_v52 }
  0x30   :  { %988 = vmatpush3.bf16.msra.mxu0 %v1105_v51 }
  0x31   :  { %1010 = vmatpush3.bf16.msra.mxu1 %v1107_v53  ;;  %989 = vmatprep.subr.bf16.mxu0 %v1108_v54 }
  0x32   :  { %1011 = vmatprep.subr.bf16.mxu1 %v1110_v56 }
  0x34   :  { %990 = vmatpush3.bf16.msra.mxu0 %v1109_v55 }
  0x35   :  { %1012 = vmatpush3.bf16.msra.mxu1 %v1111_v57  ;;  %991 = vmatprep.subr.bf16.mxu0 %v1112_v58 }
  0x36   :  { %1013 = vmatprep.subr.bf16.mxu1 %v1114_v60 }
  0x38   :  { %992 = vmatpush3.bf16.msra.mxu0 %v1113_v59 }
  0x39   :  { %1014 = vmatpush3.bf16.msra.mxu1 %v1115_v61  ;;  %993 = vmatprep.subr.bf16.mxu0 %v1116_v62 }
  0x3a   :  { %1015 = vmatprep.subr.bf16.mxu1 %v1118_v0 }
  0x3c   :  { %994 = vmatpush3.bf16.msra.mxu0 %v1117_v63 }
  0x3d   :  { %1016 = vmatpush3.bf16.msra.mxu1 %v1119_v1  ;;  %995 = vmatprep.subr.bf16.mxu0 %v1120_v2 }
  0x3e   :  { %1017 = vmatprep.subr.bf16.mxu1 %v1122_v4 }
  0x40   :  { %996 = vmatpush3.bf16.msra.mxu0 %v1121_v3 }
  0x41   :  { %1018 = vmatpush3.bf16.msra.mxu1 %v1125_v7  ;;  %1034 = vmatprep.subr.bf16.mxu0 %v1137_v13 }
  0x43   :  { %747 = vmatmul.mubr.bf16.vlgmr.msra.gmra.mrb[4].mxu0 %v859_v8 }
  0x44   :  { %1035 = vmatpush3.bf16.msra.mxu0 %v1128_v12  ;;  %787 = vmatmul.mubr.bf16.vlgmr.msra.gmra.mrb[4].mxu1 %v861_v10 }
  0x45   :  { %1036 = vmatprep.subr.bf16.mxu0 %v1137_v13  ;;  %1050 = vmatprep.mubr.msk.bf16.mxu0 %vm1138_vm0, %v1137_v13 }
  0x48   :  { %1037 = vmatpush3.bf16.msra.mxu0 %v1129_v14 }
  0x49   :  { %1038 = vmatprep.subr.bf16.mxu0 %v1137_v13 }
  0x4c   :  { %1039 = vmatpush3.bf16.msra.mxu0 %v1130_v15 }
  0x4d   :  { %1040 = vmatprep.subr.bf16.mxu0 %v1137_v13 }
  0x50   :  { %1041 = vmatpush3.bf16.msra.mxu0 %v1131_v16 }
  0x51   :  { %1042 = vmatprep.subr.bf16.mxu0 %v1137_v13 }
  0x54   :  { %1043 = vmatpush3.bf16.msra.mxu0 %v1132_v17 }
  0x55   :  { %1044 = vmatprep.subr.bf16.mxu0 %v1137_v13 }
  0x58   :  { %1045 = vmatpush3.bf16.msra.mxu0 %v1133_v18 }
  0x59   :  { %1046 = vmatprep.subr.bf16.mxu0 %v1137_v13 }
  0x5c   :  { %1047 = vmatpush3.bf16.msra.mxu0 %v1134_v19 }
  0x5d   :  { %1048 = vmatprep.subr.bf16.mxu0 %v1137_v13 }
  0x60   :  { %1049 = vmatpush3.bf16.msra.mxu0 %v1135_v20 }
  0x63   :  { %1051 = vmatmul.mubr.bf16.vlgmr.msra.gmra.mrb[8].mxu0 %v1136_v21 }
  0xf6   :  { %v953_v22 = vpop.f32.mrb[0].mxu0 }
  0xf7   :  { %v975_v23 = vpop.f32.mrb[0].mxu1  ;;  %v954_v24 = vpop.f32.mrb[1].mxu0 }
  0xf8   :  { %v976_v25 = vpop.f32.mrb[1].mxu1  ;;  %v955_v26 = vadd.f32 %v954_v24, %v953_v22  ;;  %v956_v28 = vpop.f32.mrb[2].mxu0 }
  0xf9   :  { %v977_v27 = vadd.f32 %v976_v25, %v975_v23  ;;  %v978_v29 = vpop.f32.mrb[2].mxu1  ;;  %v957_v30 = vpop.f32.mrb[3].mxu0 }
  0xfa   :  { %v979_v31 = vpop.f32.mrb[3].mxu1 }
  0xfb   :  { %v709_v32 = vadd.f32 %v977_v27, %v955_v26 }
 0x116   :  { %v997_v33 = vpop.f32.mrb[4].mxu0 }
 0x117   :  { %v998_v34 = vpop.f32.mrb[5].mxu0  ;;  %v1019_v35 = vpop.f32.mrb[4].mxu1 }
 0x118   :  { %v999_v36 = vadd.f32 %v998_v34, %v997_v33  ;;  %v1000_v37 = vpop.f32.mrb[6].mxu0  ;;  %v1020_v38 = vpop.f32.mrb[5].mxu1 }
 0x119   :  { %v1001_v39 = vpop.f32.mrb[7].mxu0  ;;  %v1021_v40 = vadd.f32 %v1020_v38, %v1019_v35  ;;  %v1022_v41 = vpop.f32.mrb[6].mxu1 }
 0x11a   :  { %v749_v42 = vadd.f32 %v999_v36, %v709_v32  ;;  %v1023_v43 = vpop.f32.mrb[7].mxu1 }
 0x11c   :  { %v789_v44 = vadd.f32 %v1021_v40, %v749_v42 }
 0x136   :  { %v828_v45 = vpop.f32.mrb[8].mxu0 }
 0x137   :  { %v829_v47 = vadd.f32 %v828_v45, %v789_v44  ;;  %v1052_v48 = vpop.f32.mrb[9].mxu0 }
 0x138   :  { %v831_v49 = vpop.f32.mrb[10].mxu0 }
 0x139   :  { %v847_v50 = vadd.f32 %v936_v46, %v829_v47  ;;  %v1053_v51 = vpop.f32.mrb[11].mxu0 }
 0x13b   :  { %v848_v52 = vmax.f32 %v847_v50, 0.0 }
 0x13d   :  { %v849_v53 = vpack.c.bf16 %v848_v52, %v848_v52 }
 0x13f   :  { %850 = vst [vmem:[%s1399_s3] sm:$0xf] %v849_v53 }

</bundles_post_ra>
